<compile_context>
chip_gen: v5e
topology: v5e:2x2
jax: 0.10.0
libtpu: 0.0.40
codegen_flags: <defaults>
</compile_context>

<pallas_src>
import functools

import jax
import jax.numpy as jnp
from jax.experimental import pallas as pl
from jax.experimental.pallas import tpu as pltpu

_MASK_PROB = 0.3
_T_TILE_CAP = 8192  # keeps double-buffered blocks + temps well under 32 MiB


def _round_up(a, b):
    return ((a + b - 1) // b) * b


def _col_offsets(f_dim, z_dim):
    """Static column layout of the single packed weight slab."""
    two_z = 2 * z_dim
    c_wmv = 0                  # (2z, f)  fused [mean; vari] weight
    c_w1z = c_wmv + f_dim      # (2z, z)  scal_linear[0] weight, z part
    c_w2 = c_w1z + z_dim       # (f, 2z)  scal_linear[2] weight
    c_bmv = c_w2 + two_z       # (2z, 1)  fused [mean; vari] bias
    c_w1m = c_bmv + 1          # (2z, 1)  scal_linear[0] weight, mask column
    c_b1 = c_w1m + 1           # (2z, 1)
    c_b2 = c_b1 + 1            # (f, 1)
    used = c_b2 + 1
    return c_wmv, c_w1z, c_w2, c_bmv, c_w1m, c_b1, c_b2, used


def _pack_params(wm, bm, wv, bv, w1, b1, w2, b2, f_dim, z_dim):
    two_z = 2 * z_dim
    c_wmv, c_w1z, c_w2, c_bmv, c_w1m, c_b1, c_b2, used = _col_offsets(f_dim, z_dim)
    rows = _round_up(max(two_z, f_dim), 8)
    cols = _round_up(used, 128)
    packed = jnp.zeros((rows, cols), jnp.float32)
    packed = packed.at[:two_z, c_wmv:c_wmv + f_dim].set(jnp.concatenate([wm, wv], 0))
    packed = packed.at[:two_z, c_w1z:c_w1z + z_dim].set(w1[:, :z_dim])
    packed = packed.at[:f_dim, c_w2:c_w2 + two_z].set(w2)
    packed = packed.at[:two_z, c_bmv].set(jnp.concatenate([bm, bv], 0))
    packed = packed.at[:two_z, c_w1m].set(w1[:, z_dim])
    packed = packed.at[:two_z, c_b1].set(b1)
    packed = packed.at[:f_dim, c_b2].set(b2)
    return packed


def init_vae_middle_params(key, f_dim, z_dim):
    """torch.nn.Linear-style init; returns (packed-kernel params, raw params)."""
    ks = jax.random.split(key, 8)

    def lin(kw, kb, fan_in, fan_out):
        bound = float(1.0 / (fan_in ** 0.5))
        w = jax.random.uniform(kw, (fan_out, fan_in), jnp.float32, -bound, bound)
        b = jax.random.uniform(kb, (fan_out,), jnp.float32, -bound, bound)
        return w, b

    wm, bm = lin(ks[0], ks[1], f_dim, z_dim)          # mean_linear
    wv, bv = lin(ks[2], ks[3], f_dim, z_dim)          # vari_linear
    w1, b1 = lin(ks[4], ks[5], z_dim + 1, 2 * z_dim)  # scal_linear[0]
    w2, b2 = lin(ks[6], ks[7], 2 * z_dim, f_dim)      # scal_linear[2]

    raw = dict(wm=wm, bm=bm, wv=wv, bv=bv, w1=w1, b1=b1, w2=w2, b2=b2)
    params = {"packed": _pack_params(wm, bm, wv, bv, w1, b1, w2, b2, f_dim, z_dim)}
    return params, raw


def _make_noise_and_mask(key, B, z_dim, T_pad, vae_denoising):
    """Channel-major noise (B, z_dim, T) and mask (B, 1, T); shared by kernel
    wrapper and the pure-JAX reference (deterministic given `key`)."""
    k_noise, k_mask = jax.random.split(key)
    noise = jax.random.normal(k_noise, (B, z_dim, T_pad), jnp.float32)
    if vae_denoising:
        u = jax.random.uniform(k_mask, (B, 1, T_pad), jnp.float32)
        mask = (u > _MASK_PROB).astype(jnp.float32)
    else:
        mask = jnp.ones((B, 1, T_pad), jnp.float32)
    return noise, mask


def _pick_t_tile(T_pad, batch):
    """Largest lane-dense tile (multiple of 128) dividing T_pad, capped for VMEM."""
    if T_pad <= _T_TILE_CAP:
        t_tile = T_pad
    else:
        t_tile = 128
        for cand in (8192, 4096, 2048, 1024, 512, 256, 128):
            if cand <= _T_TILE_CAP and T_pad % cand == 0:
                t_tile = cand
                break
    # Guarantee >= 2 grid steps so both v7x TensorCores get work.
    if batch * (T_pad // t_tile) < 2 and t_tile % 256 == 0:
        t_tile //= 2
    return t_tile


def _vae_middle_kernel(
    f_dim, z_dim,        # static (bound via functools.partial)
    x_ref,               # (1, f_dim, tT)   input block, channel-major
    w_ref,               # (rows, cols)     packed weight slab (VMEM-resident)
    noise_ref,           # (1, z_dim, tT)   standard-normal noise
    mask_ref,            # (1, 1, tT)       denoising mask (ones if disabled)
    newf_ref,            # out (1, f_dim, tT)
    mean_ref,            # out (1, tT, z_dim)
    logvar_ref,          # out (1, tT, z_dim)
):
    two_z = 2 * z_dim
    c_wmv, c_w1z, c_w2, c_bmv, c_w1m, c_b1, c_b2, _ = _col_offsets(f_dim, z_dim)

    x = x_ref[0]                                      # (f_dim, tT)
    noise = noise_ref[0]                              # (z_dim, tT)
    mask = mask_ref[0]                                # (1, tT)

    wmv = w_ref[0:two_z, c_wmv:c_wmv + f_dim]         # (2z, f)
    w1z = w_ref[0:two_z, c_w1z:c_w1z + z_dim]         # (2z, z)
    w2 = w_ref[0:f_dim, c_w2:c_w2 + two_z]            # (f, 2z)
    bmv = w_ref[0:two_z, c_bmv:c_bmv + 1]             # (2z, 1)
    w1m = w_ref[0:two_z, c_w1m:c_w1m + 1]             # (2z, 1)
    b1 = w_ref[0:two_z, c_b1:c_b1 + 1]                # (2z, 1)
    b2 = w_ref[0:f_dim, c_b2:c_b2 + 1]                # (f, 1)

    # Fused mean / log-var projection: [mean; log_var] = [Wm; Wv] @ x + [bm; bv]
    mv = jnp.dot(wmv, x, preferred_element_type=jnp.float32) + bmv   # (2z, tT)
    mean = mv[:z_dim, :]
    log_var = mv[z_dim:, :]

    # Reparameterization + denoising mask (mask == 1 when disabled).
    z = (mean + noise * jnp.exp(0.5 * log_var)) * mask               # (z, tT)

    # scal_linear: Linear(z+1 -> 2z) on concat([z, mask]) split as
    # W1z @ z + w1m (x) mask + b1 (no concat), ReLU, Linear(2z -> f).
    h = jnp.dot(w1z, z, preferred_element_type=jnp.float32) + w1m * mask + b1
    h = jnp.maximum(h, 0.0)
    new_feat = jnp.dot(w2, h, preferred_element_type=jnp.float32) + b2  # (f, tT)

    newf_ref[0] = new_feat.astype(newf_ref.dtype)
    # In-kernel transpose (XLU slot) -> outputs already in (B, T, z_dim) layout,
    # no wrapper-side transpose / extra HBM round trip.
    mean_ref[0] = jnp.transpose(mean).astype(mean_ref.dtype)
    logvar_ref[0] = jnp.transpose(log_var).astype(logvar_ref.dtype)


@functools.partial(jax.jit, static_argnames=("z_dim", "vae_denoising"))
def vae_middle_forward(params, x, key, z_dim, vae_denoising):
    """
    x: (B, C, T) with C == f_dim (PyTorch layout), float32.
    key: jax PRNG key controlling noise / denoising mask.
    Returns (new_feat (B, C, T), mean (B, T, z_dim), log_var (B, T, z_dim)).
    """
    B, f_dim, T = x.shape
    packed = params["packed"]

    T_pad = _round_up(T, 128)
    t_tile = _pick_t_tile(T_pad, B)
    n_t = T_pad // t_tile

    x = x.astype(jnp.float32)
    if T_pad != T:
        x = jnp.pad(x, ((0, 0), (0, 0), (0, T_pad - T)))
    noise, mask = _make_noise_and_mask(key, B, z_dim, T_pad, vae_denoising)

    def const2(b, t):  # packed weights: fetched once, VMEM-resident
        return (0, 0)

    grid_spec = pltpu.PrefetchScalarGridSpec(
        num_scalar_prefetch=0,
        grid=(B, n_t),
        in_specs=[
            pl.BlockSpec((1, f_dim, t_tile), lambda b, t: (b, 0, t)),   # x
            pl.BlockSpec(packed.shape, const2),                         # weights
            pl.BlockSpec((1, z_dim, t_tile), lambda b, t: (b, 0, t)),   # noise
            pl.BlockSpec((1, 1, t_tile), lambda b, t: (b, 0, t)),       # mask
        ],
        out_specs=[
            pl.BlockSpec((1, f_dim, t_tile), lambda b, t: (b, 0, t)),   # new_feat
            pl.BlockSpec((1, t_tile, z_dim), lambda b, t: (b, t, 0)),   # mean
            pl.BlockSpec((1, t_tile, z_dim), lambda b, t: (b, t, 0)),   # log_var
        ],
    )

    new_feat, mean, log_var = pl.pallas_call(
        functools.partial(_vae_middle_kernel, f_dim, z_dim),
        out_shape=(
            jax.ShapeDtypeStruct((B, f_dim, T_pad), jnp.float32),
            jax.ShapeDtypeStruct((B, T_pad, z_dim), jnp.float32),
            jax.ShapeDtypeStruct((B, T_pad, z_dim), jnp.float32),
        ),
        grid_spec=grid_spec,
        compiler_params=pltpu.CompilerParams(
            dimension_semantics=("parallel", "parallel"),
            vmem_limit_bytes=32 * 1024 * 1024,
        ),
    )(x, packed, noise, mask)

    if T_pad != T:
        new_feat = new_feat[:, :, :T]
        mean = mean[:, :T, :]
        log_var = log_var[:, :T, :]
    return new_feat, mean, log_var


def reference_forward(raw, x, key, z_dim, vae_denoising):
    """Pure-JAX replica of the PyTorch VaeMiddle.forward (same noise/mask)."""
    B, f_dim, T = x.shape
    T_pad = _round_up(T, 128)
    noise, mask = _make_noise_and_mask(key, B, z_dim, T_pad, vae_denoising)
    noise_t = jnp.transpose(noise[:, :, :T], (0, 2, 1))   # (B, T, z)
    mask_t = jnp.transpose(mask[:, :, :T], (0, 2, 1))     # (B, T, 1)

    hp = jax.lax.Precision.HIGHEST
    xt = jnp.transpose(x, (0, 2, 1))                       # (B, T, f)
    mean = jnp.einsum("btf,zf->btz", xt, raw["wm"], precision=hp) + raw["bm"]
    log_var = jnp.einsum("btf,zf->btz", xt, raw["wv"], precision=hp) + raw["bv"]
    z = (mean + noise_t * jnp.exp(0.5 * log_var)) * mask_t
    zin = jnp.concatenate([z, mask_t], axis=-1)            # (B, T, z+1)
    h = jnp.maximum(jnp.einsum("btk,hk->bth", zin, raw["w1"], precision=hp)
                    + raw["b1"], 0.0)
    nf = jnp.einsum("bth,fh->btf", h, raw["w2"], precision=hp) + raw["b2"]
    return jnp.transpose(nf, (0, 2, 1)), mean, log_var


if __name__ == "__main__":
    B, f_dim, T, z_dim = 2, 32, 512, 16

    root = jax.random.PRNGKey(0)
    k_param, k_x, k_fwd = jax.random.split(root, 3)

    params, raw = init_vae_middle_params(k_param, f_dim, z_dim)
    x = jax.random.normal(k_x, (B, f_dim, T), jnp.float32)     # (B, C, T)

    # Denoising branch (random mask) and plain branch.
    nf, mn, lv = vae_middle_forward(params, x, k_fwd, z_dim, vae_denoising=True)
    nf2, mn2, lv2 = vae_middle_forward(params, x, k_fwd, z_dim, vae_denoising=False)
    jax.block_until_ready((nf, mn, lv, nf2, mn2, lv2))

    assert nf.shape == (B, f_dim, T)
    assert mn.shape == (B, T, z_dim)
    assert lv.shape == (B, T, z_dim)

    # Full check against the pure-JAX reference (noise/mask are explicit inputs).
    for out, denoise in (((nf, mn, lv), True), ((nf2, mn2, lv2), False)):
        nf_r, mn_r, lv_r = reference_forward(raw, x, k_fwd, z_dim, denoise)
        assert bool(jnp.allclose(out[1], mn_r, atol=2e-3, rtol=2e-3))
        assert bool(jnp.allclose(out[2], lv_r, atol=2e-3, rtol=2e-3))
        assert bool(jnp.allclose(out[0], nf_r, atol=2e-3, rtol=2e-3))

    # Multi-tile / large-T path (single-tile 8192 blocks, grid (B, 1)).
    T_big = 8192
    x_big = jax.random.normal(k_x, (B, f_dim, T_big), jnp.float32)
    nf_b, mn_b, lv_b = vae_middle_forward(params, x_big, k_fwd, z_dim,
                                          vae_denoising=True)
    jax.block_until_ready((nf_b, mn_b, lv_b))
    assert nf_b.shape == (B, f_dim, T_big)
    assert mn_b.shape == (B, T_big, z_dim)
    assert bool(jnp.all(jnp.isfinite(nf_b)))

    # Ragged-T path (T=200 -> padded to 256 inside the wrapper, then sliced).
    T_rag = 200
    x_rag = jax.random.normal(k_x, (B, f_dim, T_rag), jnp.float32)
    nf_r3, mn_r3, lv_r3 = vae_middle_forward(params, x_rag, k_fwd, z_dim,
                                             vae_denoising=True)
    jax.block_until_ready((nf_r3, mn_r3, lv_r3))
    assert nf_r3.shape == (B, f_dim, T_rag)
    assert mn_r3.shape == (B, T_rag, z_dim)
    assert bool(jnp.all(jnp.isfinite(nf_r3)))

    print("KERNEL_OK")
</pallas_src>

<mosaic_0001>
module attributes {stable_mosaic.version = 11 : i64} {
  func.func @_vae_middle_kernel(%arg0: i32, %arg1: i32, %arg2: memref<1x32x512xf32, #tpu.memory_space<vmem>>, %arg3: memref<32x128xf32, #tpu.memory_space<vmem>>, %arg4: memref<1x16x512xf32, #tpu.memory_space<vmem>>, %arg5: memref<1x1x512xf32, #tpu.memory_space<vmem>>, %arg6: memref<1x32x512xf32, #tpu.memory_space<vmem>>, %arg7: memref<1x512x16xf32, #tpu.memory_space<vmem>>, %arg8: memref<1x512x16xf32, #tpu.memory_space<vmem>>) attributes {dimension_semantics = [#tpu.dimension_semantics<parallel>, #tpu.dimension_semantics<parallel>], iteration_bounds = array<i64: 2, 1>, scalar_prefetch = 0 : i64, scratch_operands = 0 : i64, tpu.core_type = #tpu.core_type<tc>, window_params = [{transform_indices = @transform_0, window_bounds = array<i64: 1, 32, 512>}, {pipeline_mode = #tpu.pipeline_mode<synchronous>, transform_indices = @transform_1, window_bounds = array<i64: 32, 128>}, {transform_indices = @transform_2, window_bounds = array<i64: 1, 16, 512>}, {transform_indices = @transform_3, window_bounds = array<i64: 1, 1, 512>}, {transform_indices = @transform_4, window_bounds = array<i64: 1, 32, 512>}, {transform_indices = @transform_5, window_bounds = array<i64: 1, 512, 16>}, {transform_indices = @transform_6, window_bounds = array<i64: 1, 512, 16>}]} {
    %c0 = arith.constant 0 : index
    %c0_0 = arith.constant 0 : index
    %c0_1 = arith.constant 0 : index
    %0 = vector.load %arg2[%c0, %c0_0, %c0_1] : memref<1x32x512xf32, #tpu.memory_space<vmem>>, vector<1x32x512xf32>
    %1 = vector.shape_cast %0 : vector<1x32x512xf32> to vector<32x512xf32>
    %c0_2 = arith.constant 0 : index
    %c0_3 = arith.constant 0 : index
    %c0_4 = arith.constant 0 : index
    %2 = vector.load %arg4[%c0_2, %c0_3, %c0_4] : memref<1x16x512xf32, #tpu.memory_space<vmem>>, vector<1x16x512xf32>
    %3 = vector.shape_cast %2 : vector<1x16x512xf32> to vector<16x512xf32>
    %c0_5 = arith.constant 0 : index
    %c0_6 = arith.constant 0 : index
    %c0_7 = arith.constant 0 : index
    %4 = vector.load %arg5[%c0_5, %c0_6, %c0_7] : memref<1x1x512xf32, #tpu.memory_space<vmem>>, vector<1x1x512xf32>
    %5 = vector.shape_cast %4 : vector<1x1x512xf32> to vector<1x512xf32>
    %c0_8 = arith.constant 0 : index
    %c0_9 = arith.constant 0 : index
    %6 = vector.load %arg3[%c0_8, %c0_9] : memref<32x128xf32, #tpu.memory_space<vmem>>, vector<32x32xf32>
    %c0_10 = arith.constant 0 : index
    %c32 = arith.constant 32 : index
    %7 = vector.load %arg3[%c0_10, %c32] : memref<32x128xf32, #tpu.memory_space<vmem>>, vector<32x16xf32>
    %c0_11 = arith.constant 0 : index
    %c48 = arith.constant 48 : index
    %8 = vector.load %arg3[%c0_11, %c48] : memref<32x128xf32, #tpu.memory_space<vmem>>, vector<32x32xf32>
    %c0_12 = arith.constant 0 : index
    %c80 = arith.constant 80 : index
    %9 = vector.load %arg3[%c0_12, %c80] : memref<32x128xf32, #tpu.memory_space<vmem>>, vector<32x1xf32>
    %c0_13 = arith.constant 0 : index
    %c81 = arith.constant 81 : index
    %10 = vector.load %arg3[%c0_13, %c81] : memref<32x128xf32, #tpu.memory_space<vmem>>, vector<32x1xf32>
    %c0_14 = arith.constant 0 : index
    %c82 = arith.constant 82 : index
    %11 = vector.load %arg3[%c0_14, %c82] : memref<32x128xf32, #tpu.memory_space<vmem>>, vector<32x1xf32>
    %c0_15 = arith.constant 0 : index
    %c83 = arith.constant 83 : index
    %12 = vector.load %arg3[%c0_15, %c83] : memref<32x128xf32, #tpu.memory_space<vmem>>, vector<32x1xf32>
    %cst = arith.constant dense<0.000000e+00> : vector<32x512xf32>
    %13 = tpu.matmul %6, %1, %cst {dimension_numbers = #tpu.dot_dimension_numbers<[1], [0], [0], [1], [0, 0, 1, 1], [], []>} : vector<32x32xf32>, vector<32x512xf32>, vector<32x512xf32> -> vector<32x512xf32>
    %14 = vector.broadcast %9 : vector<32x1xf32> to vector<32x512xf32>
    %15 = arith.addf %13, %14 : vector<32x512xf32>
    %16 = vector.extract_strided_slice %15 {offsets = [0, 0], sizes = [16, 512], strides = [1, 1]} : vector<32x512xf32> to vector<16x512xf32>
    %17 = vector.extract_strided_slice %15 {offsets = [16, 0], sizes = [16, 512], strides = [1, 1]} : vector<32x512xf32> to vector<16x512xf32>
    %cst_16 = arith.constant 5.000000e-01 : f32
    %18 = vector.broadcast %cst_16 : f32 to vector<16x512xf32>
    %19 = arith.mulf %18, %17 : vector<16x512xf32>
    %20 = math.exp %19 : vector<16x512xf32>
    %21 = arith.mulf %3, %20 : vector<16x512xf32>
    %22 = arith.addf %16, %21 : vector<16x512xf32>
    %23 = vector.broadcast %5 : vector<1x512xf32> to vector<16x512xf32>
    %24 = arith.mulf %22, %23 : vector<16x512xf32>
    %cst_17 = arith.constant dense<0.000000e+00> : vector<32x512xf32>
    %25 = tpu.matmul %7, %24, %cst_17 {dimension_numbers = #tpu.dot_dimension_numbers<[1], [0], [0], [1], [0, 0, 1, 1], [], []>} : vector<32x16xf32>, vector<16x512xf32>, vector<32x512xf32> -> vector<32x512xf32>
    %26 = vector.broadcast %10 : vector<32x1xf32> to vector<32x512xf32>
    %27 = vector.broadcast %5 : vector<1x512xf32> to vector<32x512xf32>
    %28 = arith.mulf %26, %27 : vector<32x512xf32>
    %29 = arith.addf %25, %28 : vector<32x512xf32>
    %30 = vector.broadcast %11 : vector<32x1xf32> to vector<32x512xf32>
    %31 = arith.addf %29, %30 : vector<32x512xf32>
    %cst_18 = arith.constant 0.000000e+00 : f32
    %32 = vector.broadcast %cst_18 : f32 to vector<32x512xf32>
    %33 = arith.maximumf %31, %32 : vector<32x512xf32>
    %cst_19 = arith.constant dense<0.000000e+00> : vector<32x512xf32>
    %34 = tpu.matmul %8, %33, %cst_19 {dimension_numbers = #tpu.dot_dimension_numbers<[1], [0], [0], [1], [0, 0, 1, 1], [], []>} : vector<32x32xf32>, vector<32x512xf32>, vector<32x512xf32> -> vector<32x512xf32>
    %35 = vector.broadcast %12 : vector<32x1xf32> to vector<32x512xf32>
    %36 = arith.addf %34, %35 : vector<32x512xf32>
    %c0_20 = arith.constant 0 : index
    %c0_21 = arith.constant 0 : index
    %c0_22 = arith.constant 0 : index
    %37 = vector.load %arg6[%c0_20, %c0_21, %c0_22] : memref<1x32x512xf32, #tpu.memory_space<vmem>>, vector<1x32x512xf32>
    %38 = vector.shape_cast %37 : vector<1x32x512xf32> to vector<32x512xf32>
    %39 = vector.shape_cast %36 : vector<32x512xf32> to vector<1x32x512xf32>
    tpu.vector_store %arg6[%c0_20, %c0_21, %c0_22], %39 {strides = array<i32>} : memref<1x32x512xf32, #tpu.memory_space<vmem>>, vector<1x32x512xf32>,
    %40 = tpu.transpose %16, [1, 0] : vector<16x512xf32> -> vector<512x16xf32>
    %c0_23 = arith.constant 0 : index
    %c0_24 = arith.constant 0 : index
    %c0_25 = arith.constant 0 : index
    %41 = vector.load %arg7[%c0_23, %c0_24, %c0_25] : memref<1x512x16xf32, #tpu.memory_space<vmem>>, vector<1x512x16xf32>
    %42 = vector.shape_cast %41 : vector<1x512x16xf32> to vector<512x16xf32>
    %43 = vector.shape_cast %40 : vector<512x16xf32> to vector<1x512x16xf32>
    tpu.vector_store %arg7[%c0_23, %c0_24, %c0_25], %43 {strides = array<i32>} : memref<1x512x16xf32, #tpu.memory_space<vmem>>, vector<1x512x16xf32>,
    %44 = tpu.transpose %17, [1, 0] : vector<16x512xf32> -> vector<512x16xf32>
    %c0_26 = arith.constant 0 : index
    %c0_27 = arith.constant 0 : index
    %c0_28 = arith.constant 0 : index
    %45 = vector.load %arg8[%c0_26, %c0_27, %c0_28] : memref<1x512x16xf32, #tpu.memory_space<vmem>>, vector<1x512x16xf32>
    %46 = vector.shape_cast %45 : vector<1x512x16xf32> to vector<512x16xf32>
    %47 = vector.shape_cast %44 : vector<512x16xf32> to vector<1x512x16xf32>
    tpu.vector_store %arg8[%c0_26, %c0_27, %c0_28], %47 {strides = array<i32>} : memref<1x512x16xf32, #tpu.memory_space<vmem>>, vector<1x512x16xf32>,
    return
  }
  func.func @transform_0(%arg0: i32, %arg1: i32) -> (i32, i32, i32) {
    %c0_i32 = arith.constant 0 : i32
    %c0_i32_0 = arith.constant 0 : i32
    return %arg0, %c0_i32, %arg1 : i32, i32, i32
  }
  func.func @transform_1(%arg0: i32, %arg1: i32) -> (i32, i32) {
    %c0_i32 = arith.constant 0 : i32
    %c0_i32_0 = arith.constant 0 : i32
    %c0_i32_1 = arith.constant 0 : i32
    return %c0_i32, %c0_i32_0 : i32, i32
  }
  func.func @transform_2(%arg0: i32, %arg1: i32) -> (i32, i32, i32) {
    %c0_i32 = arith.constant 0 : i32
    %c0_i32_0 = arith.constant 0 : i32
    return %arg0, %c0_i32, %arg1 : i32, i32, i32
  }
  func.func @transform_3(%arg0: i32, %arg1: i32) -> (i32, i32, i32) {
    %c0_i32 = arith.constant 0 : i32
    %c0_i32_0 = arith.constant 0 : i32
    return %arg0, %c0_i32, %arg1 : i32, i32, i32
  }
  func.func @transform_4(%arg0: i32, %arg1: i32) -> (i32, i32, i32) {
    %c0_i32 = arith.constant 0 : i32
    %c0_i32_0 = arith.constant 0 : i32
    return %arg0, %c0_i32, %arg1 : i32, i32, i32
  }
  func.func @transform_5(%arg0: i32, %arg1: i32) -> (i32, i32, i32) {
    %c0_i32 = arith.constant 0 : i32
    %c0_i32_0 = arith.constant 0 : i32
    return %arg0, %arg1, %c0_i32 : i32, i32, i32
  }
  func.func @transform_6(%arg0: i32, %arg1: i32) -> (i32, i32, i32) {
    %c0_i32 = arith.constant 0 : i32
    %c0_i32_0 = arith.constant 0 : i32
    return %arg0, %arg1, %c0_i32 : i32, i32, i32
  }
}

</mosaic_0001>

<bundles_post_ra>
// kernel: vae_middle_forward.1
= control target key start
LH: loop header
LB: loop body
LE: loop exit
PB: predicated region body
PF: predicated region fallthrough
CT: control target
= control target key end

     0   :  { %12 = vsyncpa [#allocation3], 0  ;;  %s2688_s0 = inlined_call_operand.hbm [shape: f32[2,32,512], index: 0, kind: input, shape index: {}]   ;;  %s2689_s1 = inlined_call_operand.vmem [shape: f32[32,128], index: 1, kind: input, shape index: {}]   ;;  %s2690_s2 = inlined_call_operand.vmem [shape: f32[2,16,512], index: 2, kind: input, shape index: {}]   ;;  %s2691_s3 = inlined_call_operand.vmem [shape: f32[2,1,512], index: 3, kind: input, shape index: {}]   ;;  %s2692_s4 = inlined_call_operand.hbm [shape: f32[2,32,512], index: 4, kind: output, shape index: {0}]   ;;  %s2693_s5 = inlined_call_operand.vmem [shape: f32[2,512,16], index: 5, kind: output, shape index: {1}]   ;;  %s2694_s6 = inlined_call_operand.vmem [shape: f32[2,512,16], index: 6, kind: output, shape index: {2}]  }
   0x1   :  { %14 = vsyncpa [#allocation3 + $0x1], 0 }
   0x2   :  { %15 = vsyncpa [#allocation4], 0 }
   0x3   :  { %17 = vsyncpa [#allocation4 + $0x1], 0  ;;  %s1972_s21 = smov 0   ;;  %s1974_s22 = smov 0  }
   0x4   :  { %s1976_s23 = smov 0   ;;  %s1978_s24 = smov 0  }
   0x5   :  { %s1980_s25 = smov 0   ;;  %s1982_s26 = smov 0  }
   0x6 LB: > { %s1638_s27 = sadd.s32 4294967295, %s1925_s26   ;;  %s1639_s28 = sadd.s32 4294967294, %s1925_s26   ;;  %s1925_s26 = sphi %s1982_s26, %s23_s26   ;;  %s1921_s25 = sphi %s1980_s25, %s2706_s25   ;;  %s1917_s24 = sphi %s1978_s24, %s2705_s24   ;;  %s1913_s23 = sphi %s1976_s23, %s2704_s23   ;;  %s1909_s22 = sphi %s1974_s22, %s2703_s22   ;;  %s1905_s21 = sphi %s1972_s21, %s2702_s21  }
   0x7   : > { %s35_s29 = sadd.s32 1, %s1921_s25  ;;  %s44_s30 = sadd.s32 1, %s1913_s23 }
   0x8   : > { %p37_p0 = scmp.ge.s32.totalorder %s35_s29, 2  ;;  %p51_p1 = scmp.ne.s32.totalorder %s1913_s23, %s1909_s22 }
   0x9   : > { %p52_p2 = scmp.eq.s32.totalorder %s1925_s26, 0  ;;  %p57_p3 = scmp.ne.s32.totalorder %s1909_s22, %s1905_s21 }
   0xa   : > { %s2708_s29 = smov (%p37_p0, %s35_s29), 0  ;;  %p58_p5 = scmp.eq.s32.totalorder %s1638_s27, 0 }
   0xb   : > { %2696 = sst [smem:[#allocation8_spill]] %s2708_s29  ;;  %p2013_p4 = por %p52_p2, %p51_p1 }
   0xc   : > { %s39_s8 = ssub.s32 %s1921_s25, %s2708_s29  ;;  %p160_p6 = scmp.eq.s32.totalorder %s1638_s27, 1 }
   0xd   : > { %p42_p7 = scmp.eq.s32.totalorder %s39_s8, 0  ;;  %p2019_p8 = por %p58_p5, %p57_p3 }
   0xe   : > { %p2023_p9 = por %p160_p6, %p51_p1  ;;  %p166_p10 = scmp.eq.s32.totalorder %s1639_s28, 1 }
   0xf   : > { %s2028_s11 = scalar_select %p42_p7, %s1913_s23, %s44_s30  }
  0x10   : > { %p2030_p11 = por %p166_p10, %p57_p3  ;;  %p1641_p12 = scmp.ge.s32.totalorder %s1925_s26, 2 }
  0x11   : > { %p1725_p13 = scmp.lt.s32.totalorder %s1925_s26, 2  ;;  %s245_s13 = sand.u32 1, %s1913_s23  }
  0x12   : > { %s1642_s14 = sshll.u32 %s245_s13, 7  ;;  %s1708_s15 = sshll.u32 %s1921_s25, 7 }
  0x13   : > { %s256_s18 = scalar_lea.hbm %s2688_s0, %s1708_s15  ;;  %s249_s19 = scalar_lea.vmem [#allocation2], %s1642_s14 }
  0x14   : > { %s259_s20 = sshll.u32 %s249_s19, 4  ;;  %s257_s27 = sshll.u32 %s256_s18, 4  ;;  %s260_s20 = int_to_ptr.vmem [resolvable:$true] %s259_s20  ;;  %s258_s27 = int_to_ptr.hbm [resolvable:$true] %s257_s27 }
  0x15   : > { %p1718_p0 = pnand %p1725_p13, %p2013_p4  ;;  %p1645_p1 = scmp.ge.s32.totalorder %s1925_s26, 1 }
  0x16   : > { %s246_s28 = scalar_lea.sflag [#allocation3], %s245_s13  ;;  %s1927_s30 = smov 512  }
  0x17   : > { %s1928_s8 = smov 32   ;;  %p292_p2 = scmp.lt.s32.totalorder %s1925_s26, 3 }
  0x18   : > { %1720 = dma.hbm_to_vmem [thread:$0]  (!%p1718_p0), %s258_s27, 2048, %s260_s20, %s246_s28, %s1927_s30, %s1927_s30, %s1928_s8  }
  0x19   : > { %p293_p3 = pnand %p1645_p1, %p292_p2 }
  0x1a   : > { %s2046_s29 = sand.u32 (!%p293_p3), 1, %s1909_s22  }
  0x1b   : > { %296 = sbr.rel (%p293_p3) target bundleno = 713 (0x2c9), region = 36  ;;  %s1646_s14 = sshll.u32 (!%p293_p3), %s2046_s29, 7 }
  0x1c   : > { %s299_s15 = scalar_lea.sflag (!%p293_p3), [#allocation3], %s2046_s29  ;;  %s2052_s7 = scalar_lea.vmem (!%p293_p3), [#allocation2], %s1646_s14 }
  0x20   : > { %1896 = dma.done.wait (%p2019_p8), %s299_s15, 2048  }
  0x21   : > { %1898 = vsyncadd (%p2019_p8), %s299_s15, 4294965248  ;;  %v1929_v0 = vmov 80   ;;  %v420_v1 = vld [vmem:[%s2052_s7 + $0x60] sm:$0xff]  ;;  %v421_v2 = vld [vmem:[%s2052_s7 + $0x68] sm:$0xff]  ;;  %vm457_vm0 = vcmask 261120   ;;  %v1930_v19 = vmov 81  }
  0x22   : > { %1786 = vset.pattern.permute.xlu0 %v1929_v0  ;;  %1787 = vset.pattern.permute.xlu1 %v1929_v0  ;;  %v422_v3 = vld [vmem:[%s2052_s7 + $0x70] sm:$0xff]  ;;  %v423_v4 = vld [vmem:[%s2052_s7 + $0x78] sm:$0xff]  ;;  %v416_v5 = vld [vmem:[%s2052_s7 + $0x40] sm:$0xff]  ;;  %s1931_s28 = smov 96   ;;  %v1932_v22 = vmov 82   ;;  %v1933_v23 = vmov 83  }
  0x23   : > { %478 = vmatpush.msra.mxu0 %v420_v1  ;;  %507 = vmatpush.msra.mxu1 %v421_v2  ;;  %v417_v6 = vld [vmem:[%s2052_s7 + $0x48] sm:$0xff]  ;;  %v418_v7 = vld [vmem:[%s2052_s7 + $0x50] sm:$0xff]  ;;  %v419_v8 = vld [vmem:[%s2052_s7 + $0x58] sm:$0xff]  ;;  %s1934_s30 = smov 80   ;;  %p369_p4 = scmp.lt.s32.totalorder %s1917_s24, 1  ;;  %vm679_vm1 = vcmask 130048  }
  0x24   : > { %536 = vmatpush.msra.mxu2 %v422_v3  ;;  %565 = vmatpush.msra.mxu3 %v423_v4  ;;  %v412_v9 = vld [vmem:[%s2052_s7 + $0x20] sm:$0xff]  ;;  %v413_v10 = vld [vmem:[%s2052_s7 + $0x28] sm:$0xff]  ;;  %v414_v11 = vld [vmem:[%s2052_s7 + $0x30] sm:$0xff] }
  0x25   : > { %479 = vmatpush.msra.mxu0 %v416_v5  ;;  %508 = vmatpush.msra.mxu1 %v417_v6  ;;  %v415_v12 = vld [vmem:[%s2052_s7 + $0x38] sm:$0xff]  ;;  %v408_v13 = vld [vmem:[%s2052_s7] sm:$0xff]  ;;  %v409_v14 = vld [vmem:[%s2052_s7 + $0x8] sm:$0xff]  ;;  %s2151_s8 = scalar_select %p369_p4, %s1917_s24, 1 }
  0x26   : > { %537 = vmatpush.msra.mxu2 %v418_v7  ;;  %566 = vmatpush.msra.mxu3 %v419_v8  ;;  %v410_v15 = vld [vmem:[%s2052_s7 + $0x10] sm:$0xff]  ;;  %v411_v16 = vld [vmem:[%s2052_s7 + $0x18] sm:$0xff]  ;;  %v433_v17 = vld [vmem:[%s2689_s1] sm:$0xff]  ;;  %s1863_s7 = scalar_lea.hbm %s2692_s4, 256 }
  0x27   : > { %480 = vmatpush.msra.mxu0 %v412_v9  ;;  %509 = vmatpush.msra.mxu1 %v413_v10  ;;  %v435_v18 = vld [vmem:[%s2689_s1 + $0x10] sm:$0xff]  ;;  %v434_v20 = vld [vmem:[%s2689_s1 + $0x8] sm:$0xff]  ;;  %v436_v21 = vld [vmem:[%s2689_s1 + $0x18] sm:$0xff]  ;;  %s1709_s15 = sshll.u32 %s2151_s8, 6  ;;  %s1650_s16 = sshll.u32 %s2151_s8, 2 }
  0x28   : > { %538 = vmatpush.msra.mxu2 %v414_v11  ;;  %567 = vmatpush.msra.mxu3 %v415_v12  ;;  %s2162_s13 = scalar_lea.vmem %s2690_s2, %s1709_s15  ;;  %s385_s19 = scalar_lea.vmem %s2691_s3, %s1650_s16 }
  0x29   : > { %481 = vmatpush.msra.mxu0 %v408_v13  ;;  %510 = vmatpush.msra.mxu1 %v409_v14  ;;  %v424_v10 = vld [vmem:[%s2162_s13] sm:$0xff]  ;;  %v425_v12 = vld [vmem:[%s2162_s13 + $0x8] sm:$0xff]  ;;  %s1710_s20 = sshll.u32 %s2151_s8, 9  ;;  %s2469_s8 = scalar_lea.vmem [#allocation5], %s1646_s14 }
  0x2a   : > { %539 = vmatpush.msra.mxu2 %v410_v15  ;;  %568 = vmatpush.msra.mxu3 %v411_v16  ;;  %v428_v15 = vld [vmem:[%s2162_s13 + $0x20] sm:$0xff]  ;;  %s2427_s9 = scalar_lea.vmem %s2694_s6, %s1710_s20  ;;  %s1712_s14 = sshll.u32 %s1917_s24, 7 }
  0x2b   : > { %1655 = vmatmul.msk.f32.vlgmr.msra.gmra.mxu0 %vm457_vm0, %v433_v17  ;;  %1659 = vmatmul.msk.f32.vlgmr.msra.gmra.mxu1 %vm457_vm0, %v433_v17  ;;  %s1432_s17 = scalar_lea.hbm %s2692_s4, %s1712_s14  ;;  %s1433_s18 = sshll.u32 %s2469_s8, 4  ;;  %s1434_s18 = int_to_ptr.vmem [resolvable:$true] %s1433_s18 }
  0x2c   : > { %1663 = vmatmul.msk.f32.vlgmr.msra.gmra.mxu2 %vm457_vm0, %v433_v17  ;;  %1667 = vmatmul.msk.f32.vlgmr.msra.gmra.mxu3 %vm457_vm0, %v433_v17 }
  0x2d   : > { %439 = vperm.xlu0 %1786, %v433_v17   ;;  %449 = vperm.xlu1 %1787, %v435_v18  }
  0x2e   : > { %1788 = vset.pattern.permute.xlu2 %v1930_v19 }
  0x2f   : > { %640 = vperm.xlu2 %1788, %v433_v17  }
  0x33   : > { %1656 = vmatmul.msk.f32.gmra.mxu0 %vm457_vm0, %v434_v20  ;;  %1660 = vmatmul.msk.f32.gmra.mxu1 %vm457_vm0, %v434_v20 }
  0x34   : > { %1664 = vmatmul.msk.f32.gmra.mxu2 %vm457_vm0, %v434_v20  ;;  %1668 = vmatmul.msk.f32.gmra.mxu3 %vm457_vm0, %v434_v20 }
  0x35   : > { %444 = vperm.xlu0 %1786, %v434_v20   ;;  %454 = vperm.xlu1 %1787, %v436_v21  }
  0x37   : > { %644 = vperm.xlu2 %1788, %v434_v20  }
  0x3b   : > { %1657 = vmatmul.msk.f32.gmra.mxu0 %vm457_vm0, %v435_v18  ;;  %1661 = vmatmul.msk.f32.gmra.mxu1 %vm457_vm0, %v435_v18 }
  0x3c   : > { %1665 = vmatmul.msk.f32.gmra.mxu2 %vm457_vm0, %v435_v18  ;;  %1669 = vmatmul.msk.f32.gmra.mxu3 %vm457_vm0, %v435_v18 }
  0x3d   : > { %1790 = vset.pattern.permute.xlu1 %v1930_v19  ;;  %1789 = vset.pattern.permute.xlu0 %v1930_v19 }
  0x3e   : > { %652 = vperm.xlu1 %1790, %v436_v21   ;;  %648 = vperm.xlu0 %1789, %v435_v18  }
  0x3f   : > { %671 = vrot.lane.b32.xlu2 %v433_v17, %s1931_s28 }
  0x40   : > { %1792 = vset.pattern.permute.xlu2 %v1932_v22 }
  0x43   : > { %1658 = vmatmul.msk.f32.gmra.mxu0 %vm457_vm0, %v436_v21  ;;  %1662 = vmatmul.msk.f32.gmra.mxu1 %vm457_vm0, %v436_v21 }
  0x44   : > { %1666 = vmatmul.msk.f32.gmra.mxu2 %vm457_vm0, %v436_v21  ;;  %1670 = vmatmul.msk.f32.gmra.mxu3 %vm457_vm0, %v436_v21 }
  0x46   : > { %673 = vrot.lane.b32.xlu1 %v434_v20, %s1931_s28  ;;  %677 = vrot.lane.b32.xlu0 %v436_v21, %s1931_s28 }
  0x47   : > { %1791 = vset.pattern.permute.xlu1 %v1932_v22  ;;  %675 = vrot.lane.b32.xlu2 %v435_v18, %s1931_s28 }
  0x48   : > { %1793 = vset.pattern.permute.xlu0 %v1932_v22 }
  0x4e   : > { %805 = vperm.xlu1 %1791, %v433_v17   ;;  %813 = vperm.xlu0 %1793, %v435_v18  }
  0x4f   : > { %809 = vperm.xlu2 %1792, %v434_v20  }
  0x56   : > { %817 = vperm.xlu1 %1791, %v436_v21   ;;  %1796 = vset.pattern.permute.xlu0 %v1933_v23 }
  0x57   : > { %1794 = vset.pattern.permute.xlu2 %v1933_v23  ;;  %865 = vperm.xlu0 %1796, %v436_v21  }
  0x58   : > { %853 = vperm.xlu2 %1794, %v433_v17  }
  0x5e   : > { %1795 = vset.pattern.permute.xlu1 %v1933_v23 }
  0x5f   : > { %857 = vperm.xlu1 %1795, %v434_v20  }
  0x60   : > { %861 = vperm.xlu2 %1794, %v435_v18  }
  0x67   : > { %868 = vrot.lane.b32.xlu1 %v433_v17, %s1934_s30  ;;  %v429_v17 = vld [vmem:[%s2162_s13 + $0x28] sm:$0xff] }
  0x68   : > { %870 = vrot.lane.b32.xlu2 %v434_v20, %s1934_s30  ;;  %v432_v20 = vld [vmem:[%s385_s19] sm:$0xf]  ;;  %s1435_s19 = sshll.u32 %s1432_s17, 4  ;;  %s1436_s19 = int_to_ptr.hbm [resolvable:$true] %s1435_s19 }
  0x69   : > { %s1857_s27 = sshra.s32 %s1436_s19, 4  ;;  %s1858_s27 = int_to_ptr.hbm [resolvable:$true] %s1857_s27 }
  0x6a   : > { %s1859_s24 = scalar_lea.hbm %s1858_s27, 128  ;;  %p1864_p8 = scmp.lt.s32.totalorder %s1858_s27, %s2692_s4 }
  0x6b   : > { %p1860_p5 = scmp.ne.s32.totalorder %s1858_s27, %s1859_s24  ;;  %p1865_p10 = scmp.lt.s32.totalorder %s1863_s7, %s1859_s24 }
  0x6d   : > { %p1861_p6 = pnand %p1860_p5, %p2023_p9  ;;  %p1866_p13 = por %p1865_p10, %p1864_p8 }
  0x6f   : > { %872 = vrot.lane.b32.xlu1 %v435_v18, %s1934_s30  ;;  %p1862_p7 = pneg %p1861_p6 }
  0x70   : > { %874 = vrot.lane.b32.xlu2 %v436_v21, %s1934_s30  ;;  %s2254_s30 = scalar_lea.vmem %s2693_s5, %s1710_s20  ;;  %s1401_s20 = scalar_lea.sflag [#allocation4], %s2046_s29 }
  0x71   : > { %p1867_p0 = pnand %p1866_p13, %p1862_p7 }
  0x89   : > { %v2153_v59 = vpop.permute.xlu2 %640 }
  0x91   : > { %v2177_v16 = vpop.permute.xlu2 %644 }
  0x9f   : > { %v2102_v24 = vpop.permute.xlu0 %439  ;;  %v450_v37 = vpop.permute.xlu1 %449 }
  0xa7   : > { %v2112_v29 = vpop.permute.xlu0 %444  ;;  %v455_v47 = vpop.permute.xlu1 %454 }
  0xa8   : > { %v483_v25 = vpop.f32.mrf.mxu0  ;;  %v512_v26 = vpop.f32.mrf.mxu1 }
  0xa9   : > { %v2105_v27 = vadd.f32 %v483_v25, %v2102_v24  ;;  %v2108_v28 = vadd.f32 %v512_v26, %v2102_v24 }
  0xab   : > { %1048 = vxpose.xlu1.b32.start [1/2] (short) %v2108_v28, 128  ;;  %1016 = vxpose.xlu0.b32.start [1/2] (short) %v2105_v27, 128 }
  0xaf   : > { %v541_v30 = vpop.f32.mrf.mxu2  ;;  %v2114_v31 = vpop.f32.mrf.mxu3 }
  0xb0   : > { %v2117_v32 = vadd.f32 %v541_v30, %v2102_v24  ;;  %v486_v33 = vpop.f32.mrf.mxu0  ;;  %v515_v34 = vpop.f32.mrf.mxu1  ;;  %v426_v30 = vld [vmem:[%s2162_s13 + $0x10] sm:$0xff] }
  0xb1   : > { %v2120_v35 = vadd.f32 %v486_v33, %v2112_v29  ;;  %v2123_v36 = vadd.f32 %v515_v34, %v2112_v29 }
  0xb2   : > { %1080 = vxpose.xlu2.b32.start [1/2] (short) %v2117_v32, 128 }
  0xb3   : > { %1049 = vxpose.xlu1.b32.end [2/2] (short) %v2123_v36, 128  ;;  %1017 = vxpose.xlu0.b32.end [2/2] (short) %v2120_v35, 128 }
  0xb7   : > { %v544_v38 = vpop.f32.mrf.mxu2  ;;  %v2128_v39 = vpop.f32.mrf.mxu3 }
  0xb8   : > { %v2131_v40 = vadd.f32 %v544_v38, %v2112_v29  ;;  %v489_v41 = vpop.f32.mrf.mxu0  ;;  %v518_v42 = vpop.f32.mrf.mxu1 }
  0xb9   : > { %v2133_v43 = vadd.f32 %v489_v41, %v450_v37  ;;  %v2135_v44 = vadd.f32 %v518_v42, %v450_v37  ;;  %v427_v41 = vld [vmem:[%s2162_s13 + $0x18] sm:$0xff] }
  0xba   : > { %1081 = vxpose.xlu2.b32.end [2/2] (short) %v2131_v40, 128 }
  0xbb   : > { %v582_v45 = vmul.f32 0.5, %v2133_v43  ;;  %v583_v46 = vmul.f32 0.5, %v2135_v44 }
  0xbd   : > { %v590_v50 = vmul.f32 1.442695, %v582_v45  ;;  %v592_v55 = vmul.f32 1.442695, %v583_v46  ;;  %v2187_v45 = vperm.slane %v432_v20, 1 }
  0xbf   : > { %v547_v48 = vpop.f32.mrf.mxu2  ;;  %v576_v49 = vpop.f32.mrf.mxu3  ;;  %1797 = vpow2.f32 %v590_v50  ;;  %v431_v50 = vld [vmem:[%s2162_s13 + $0x38] sm:$0xff] }
  0xc0   : > { %v2141_v51 = vadd.f32 %v547_v48, %v450_v37  ;;  %v2143_v52 = vadd.f32 %v576_v49, %v450_v37  ;;  %v492_v53 = vpop.f32.mrf.mxu0  ;;  %v521_v54 = vpop.f32.mrf.mxu1  ;;  %1799 = vpow2.f32 %v592_v55  ;;  %v2182_v37 = vperm.slane %v432_v20, 0 }
  0xc1   : > { %v2145_v56 = vadd.f32 %v492_v53, %v455_v47  ;;  %v2147_v57 = vadd.f32 %v521_v54, %v455_v47  ;;  %v2192_v49 = vpop.permute.xlu1 %652 }
  0xc2   : > { %v584_v58 = vmul.f32 0.5, %v2141_v51  ;;  %v585_v60 = vmul.f32 0.5, %v2143_v52 }
  0xc3   : > { %v586_v61 = vmul.f32 0.5, %v2145_v56  ;;  %v587_v62 = vmul.f32 0.5, %v2147_v57 }
  0xc4   : > { %v594_v1 = vmul.f32 1.442695, %v584_v58  ;;  %v596_v2 = vmul.f32 1.442695, %v585_v60  ;;  %v574_v60 = vadd.f32 %v2128_v39, %v2112_v29 }
  0xc5   : > { %v598_v63 = vmul.f32 1.442695, %v586_v61  ;;  %v600_v0 = vmul.f32 1.442695, %v587_v62  ;;  %v1798_v7 = vpop.eup %1797 }
  0xc6   : > { %v1800_v11 = vpop.eup %1799  ;;  %v606_v18 = vmul.f32 %v1798_v7, %v424_v10  ;;  %v2218_v7 = vpop.permute.xlu0 %648 }
  0xc7   : > { %v550_v3 = vpop.f32.mrf.mxu2  ;;  %v579_v4 = vpop.f32.mrf.mxu3  ;;  %1801 = vpow2.f32 %v598_v63  ;;  %v607_v21 = vmul.f32 %v1800_v11, %v425_v12 }
  0xc8   : > { %v2164_v5 = vadd.f32 %v550_v3, %v455_v47  ;;  %v2166_v6 = vadd.f32 %v579_v4, %v455_v47  ;;  %1803 = vpow2.f32 %v600_v0  ;;  %v614_v38 = vadd.f32 %v606_v18, %v2105_v27  ;;  %v430_v47 = vld [vmem:[%s2162_s13 + $0x30] sm:$0xff]  ;;  %v672_v63 = vpop.permute.xlu2 %671 }
  0xc9   : > { %1805 = vpow2.f32 %v594_v1  ;;  %v615_v46 = vadd.f32 %v607_v21, %v2108_v28  ;;  %v571_v28 = vadd.f32 %v2114_v31, %v2102_v24  ;;  %v2203_v1 = vperm.slane %v432_v20, 2 }
  0xca   : > { %v588_v8 = vmul.f32 0.5, %v2164_v5  ;;  %v589_v9 = vmul.f32 0.5, %v2166_v6  ;;  %1807 = vpow2.f32 %v596_v2  ;;  %v631_v27 = vmul.f32 %v2182_v37, %v614_v38 }
  0xcb   : > { %v632_v61 = vmul.f32 %v2187_v45, %v615_v46  ;;  %v2207_v24 = vperm.slane %v432_v20, 3 }
  0xcc   : > { %v602_v13 = vmul.f32 1.442695, %v588_v8  ;;  %v604_v14 = vmul.f32 1.442695, %v589_v9 }
  0xcd   : > { %v1802_v19 = vpop.eup %1801 }
  0xce   : > { %1809 = vpow2.f32 %v602_v13  ;;  %v1804_v22 = vpop.eup %1803  ;;  %v610_v23 = vmul.f32 %v1802_v19, %v428_v15  ;;  %v678_v9 = vpop.permute.xlu0 %677 }
  0xcf   : > { %1811 = vpow2.f32 %v604_v14  ;;  %v1806_v25 = vpop.eup %1805  ;;  %v611_v26 = vmul.f32 %v1804_v22, %v429_v17 }
  0xd0   : > { %v1808_v33 = vpop.eup %1807  ;;  %v618_v34 = vadd.f32 %v610_v23, %v2120_v35  ;;  %v608_v53 = vmul.f32 %v1806_v25, %v426_v30  ;;  %v676_v8 = vpop.permute.xlu2 %675 }
  0xd1   : > { %v619_v42 = vadd.f32 %v611_v26, %v2123_v36  ;;  %v609_v55 = vmul.f32 %v1808_v33, %v427_v41 }
  0xd2   : > { %v635_v48 = vmul.f32 %v2182_v37, %v618_v34  ;;  %v616_v2 = vadd.f32 %v608_v53, %v2117_v32  ;;  %v674_v32 = vpop.permute.xlu1 %673 }
  0xd3   : > { %v636_v35 = vmul.f32 %v2187_v45, %v619_v42  ;;  %v617_v31 = vadd.f32 %v609_v55, %v571_v28  ;;  %v667_v55 = vmul.f32 %v2192_v49, %v2182_v37 }
  0xd4   : > { %v1810_v54 = vpop.eup %1809  ;;  %702 = vmatpush.msrb.mxu0 %v635_v48 }
  0xd5   : > { %v1812_v58 = vpop.eup %1811  ;;  %v612_v36 = vmul.f32 %v1810_v54, %v430_v47  ;;  %731 = vmatpush.msrb.mxu1 %v636_v35  ;;  %v634_v4 = vmul.f32 %v2207_v24, %v617_v31  ;;  %v663_v47 = vmul.f32 %v2218_v7, %v2182_v37  ;;  %v659_v54 = vmul.f32 %v2177_v16, %v2182_v37 }
  0xd6   : > { %v613_v62 = vmul.f32 %v1812_v58, %v431_v50  ;;  %703 = vmatpush.msrb.mxu0 %v631_v27  ;;  %v2242_v14 = vpop.permute.xlu0 %813  ;;  %v664_v50 = vmul.f32 %v2218_v7, %v2187_v45  ;;  %v660_v58 = vmul.f32 %v2177_v16, %v2187_v45 }
  0xd7   : > { %v620_v0 = vadd.f32 %v612_v36, %v2131_v40  ;;  %732 = vmatpush.msrb.mxu1 %v632_v61  ;;  %1671 = vmatmul.msk.f32.vlgmr.msrb.gmra.mxu0 %vm679_vm1, %v672_v63  ;;  %v633_v40 = vmul.f32 %v2203_v1, %v616_v2 }
  0xd8   : > { %v621_v3 = vadd.f32 %v613_v62, %v574_v60  ;;  %1675 = vmatmul.msk.f32.vlgmr.msrb.gmra.mxu1 %vm679_vm1, %v672_v63  ;;  %v2230_v10 = vpop.permute.xlu2 %809 }
  0xd9   : > { %v637_v29 = vmul.f32 %v2203_v1, %v620_v0  ;;  %v656_v0 = vmul.f32 %v2153_v59, %v2187_v45 }
  0xda   : > { %v638_v39 = vmul.f32 %v2207_v24, %v621_v3  ;;  %v2266_v22 = vpop.permute.xlu1 %805 }
  0xdb   : > { %760 = vmatpush.msrb.mxu2 %v637_v29 }
  0xdc   : > { %789 = vmatpush.msrb.mxu3 %v638_v39 }
  0xdd   : > { %761 = vmatpush.msrb.mxu2 %v633_v40 }
  0xde   : > { %790 = vmatpush.msrb.mxu3 %v634_v4  ;;  %1679 = vmatmul.msk.f32.vlgmr.msrb.gmra.mxu2 %vm679_vm1, %v672_v63  ;;  %v2247_v17 = vpop.permute.xlu0 %865 }
  0xdf   : > { %1683 = vmatmul.msk.f32.vlgmr.msrb.gmra.mxu3 %vm679_vm1, %v672_v63  ;;  %1672 = vmatmul.msk.f32.gmra.mxu0 %vm679_vm1, %v674_v32 }
  0xe0   : > { %1676 = vmatmul.msk.f32.gmra.mxu1 %vm679_vm1, %v674_v32  ;;  %v2232_v11 = vpop.permute.xlu2 %853 }
  0xe2   : > { %v2276_v42 = vpop.permute.xlu1 %817 }
  0xe6   : > { %1680 = vmatmul.msk.f32.gmra.mxu2 %vm679_vm1, %v674_v32 }
  0xe7   : > { %1684 = vmatmul.msk.f32.gmra.mxu3 %vm679_vm1, %v674_v32  ;;  %1673 = vmatmul.msk.f32.gmra.mxu0 %vm679_vm1, %v676_v8 }
  0xe8   : > { %1677 = vmatmul.msk.f32.gmra.mxu1 %vm679_vm1, %v676_v8  ;;  %v2235_v12 = vpop.permute.xlu2 %861 }
  0xea   : > { %v2302_v39 = vpop.permute.xlu1 %857 }
  0xee   : > { %1681 = vmatmul.msk.f32.gmra.mxu2 %vm679_vm1, %v676_v8 }
  0xef   : > { %1685 = vmatmul.msk.f32.gmra.mxu3 %vm679_vm1, %v676_v8  ;;  %1674 = vmatmul.msk.f32.gmra.mxu0 %vm679_vm1, %v678_v9 }
  0xf0   : > { %1678 = vmatmul.msk.f32.gmra.mxu1 %vm679_vm1, %v678_v9  ;;  %v2239_v13 = vpop.permute.xlu2 %870 }
  0xf6   : > { %1682 = vmatmul.msk.f32.gmra.mxu2 %vm679_vm1, %v678_v9 }
  0xf7   : > { %1686 = vmatmul.msk.f32.gmra.mxu3 %vm679_vm1, %v678_v9 }
  0xf8   : > { %v2244_v15 = vpop.permute.xlu2 %874 }
 0x12b   : > { %1240 = vxpose.xlu1.b32.start [1/2] (short) %v2135_v44, 128  ;;  %1112 = vxpose.xlu0.b32.start [1/2] (short) %v571_v28, 128  ;;  %v668_v28 = vmul.f32 %v2192_v49, %v2187_v45 }
 0x132   : > { %1208 = vxpose.xlu2.b32.start [1/2] (short) %v2133_v43, 128 }
 0x133   : > { %1241 = vxpose.xlu1.b32.end [2/2] (short) %v2147_v57, 128  ;;  %1113 = vxpose.xlu0.b32.end [2/2] (short) %v574_v60, 128  ;;  %v655_v60 = vmul.f32 %v2153_v59, %v2182_v37 }
 0x13a   : > { %1209 = vxpose.xlu2.b32.end [2/2] (short) %v2145_v56, 128 }
 0x14b   : > { %v1096_v43 = vpop.trf.xlu2 }
 0x14c   : > { %1176 = vst.msk [vmem:[%s2254_s30 + $0x100] sm:$0xff] %vm679_vm1, %v1096_v43 }
 0x14f   : > { %v1032_v44 = vpop.trf.xlu0 }
 0x150   : > { %1144 = vst.msk [vmem:[%s2254_s30] sm:$0xff] %vm679_vm1, %v1032_v44 }
 0x153   : > { %v1097_v56 = vpop.trf.xlu2 }
 0x154   : > { %1177 = vst.msk [vmem:[%s2254_s30 + $0x108] sm:$0xff] %vm679_vm1, %v1097_v56  ;;  %v705_v57 = vpop.f32.mrf.mxu0 }
 0x155   : > { %v734_v18 = vpop.f32.mrf.mxu1  ;;  %v706_v29 = vadd.f32 %v705_v57, %v655_v60 }
 0x156   : > { %v735_v37 = vadd.f32 %v734_v18, %v656_v0 }
 0x157   : > { %v1033_v19 = vpop.trf.xlu0 }
 0x158   : > { %1145 = vst.msk [vmem:[%s2254_s30 + $0x8] sm:$0xff] %vm679_vm1, %v1033_v19  ;;  %v821_v18 = vadd.f32 %v2266_v22, %v735_v37 }
 0x15b   : > { %v1098_v20 = vpop.trf.xlu2 }
 0x15c   : > { %1178 = vst.msk [vmem:[%s2254_s30 + $0x110] sm:$0xff] %vm679_vm1, %v1098_v20  ;;  %v708_v21 = vpop.f32.mrf.mxu0  ;;  %v820_v20 = vadd.f32 %v2266_v22, %v706_v29 }
 0x15d   : > { %v737_v23 = vpop.f32.mrf.mxu1  ;;  %v709_v61 = vadd.f32 %v708_v21, %v659_v54  ;;  %v669_v54 = vmul.f32 %v2192_v49, %v2203_v1 }
 0x15e   : > { %v738_v2 = vadd.f32 %v737_v23, %v660_v58 }
 0x15f   : > { %v1034_v25 = vpop.trf.xlu0  ;;  %v824_v45 = vadd.f32 %v2230_v10, %v709_v61 }
 0x160   : > { %1146 = vst.msk [vmem:[%s2254_s30 + $0x10] sm:$0xff] %vm679_vm1, %v1034_v25  ;;  %v825_v56 = vadd.f32 %v2230_v10, %v738_v2 }
 0x161   : > { %v2270_v26 = vpop.f32.mrf.mxu2  ;;  %v840_v25 = vmax.f32 %v824_v45, 0.0 }
 0x162   : > { %v2272_v30 = vpop.f32.mrf.mxu3 }
 0x163   : > { %v1099_v33 = vpop.trf.xlu2 }
 0x164   : > { %1179 = vst.msk [vmem:[%s2254_s30 + $0x118] sm:$0xff] %vm679_vm1, %v1099_v33  ;;  %v711_v34 = vpop.f32.mrf.mxu0  ;;  %v665_v33 = vmul.f32 %v2218_v7, %v2203_v1 }
 0x165   : > { %v740_v38 = vpop.f32.mrf.mxu1  ;;  %v712_v35 = vadd.f32 %v711_v34, %v663_v47  ;;  %v841_v34 = vmax.f32 %v825_v56, 0.0  ;;  %v836_v47 = vmax.f32 %v820_v20, 0.0 }
 0x166   : > { %v741_v27 = vadd.f32 %v740_v38, %v664_v50  ;;  %v666_v38 = vmul.f32 %v2218_v7, %v2207_v24  ;;  %v661_v50 = vmul.f32 %v2177_v16, %v2203_v1 }
 0x167   : > { %v1035_v41 = vpop.trf.xlu0  ;;  %v828_v40 = vadd.f32 %v2242_v14, %v712_v35  ;;  %v837_v35 = vmax.f32 %v821_v18, 0.0 }
 0x168   : > { %1147 = vst.msk [vmem:[%s2254_s30 + $0x18] sm:$0xff] %vm679_vm1, %v1035_v41  ;;  %v829_v32 = vadd.f32 %v2242_v14, %v741_v27  ;;  %v670_v27 = vmul.f32 %v2192_v49, %v2207_v24 }
 0x169   : > { %v2280_v46 = vpop.f32.mrf.mxu2  ;;  %v844_v21 = vmax.f32 %v828_v40, 0.0 }
 0x16a   : > { %v2284_v48 = vpop.f32.mrf.mxu3  ;;  %v845_v23 = vmax.f32 %v829_v32, 0.0  ;;  %v767_v60 = vadd.f32 %v2280_v46, %v661_v50 }
 0x16b   : > { %v1100_v53 = vpop.trf.xlu2 }
 0x16c   : > { %1180 = vst.msk [vmem:[%s2254_s30 + $0x120] sm:$0xff] %vm679_vm1, %v1100_v53  ;;  %v714_v36 = vpop.f32.mrf.mxu0 }
 0x16d   : > { %v715_v62 = vadd.f32 %v714_v36, %v667_v55  ;;  %v743_v63 = vpop.f32.mrf.mxu1  ;;  %v662_v55 = vmul.f32 %v2177_v16, %v2207_v24  ;;  %v869_v36 = vpop.permute.xlu1 %868 }
 0x16e   : > { %v744_v3 = vadd.f32 %v743_v63, %v668_v28  ;;  %v657_v28 = vmul.f32 %v2153_v59, %v2203_v1  ;;  %v658_v63 = vmul.f32 %v2153_v59, %v2207_v24 }
 0x16f   : > { %v1036_v31 = vpop.trf.xlu0  ;;  %v832_v4 = vadd.f32 %v2276_v42, %v715_v62  ;;  %v796_v16 = vadd.f32 %v2284_v48, %v662_v55 }
 0x170   : > { %1148 = vst.msk [vmem:[%s2254_s30 + $0x20] sm:$0xff] %vm679_vm1, %v1036_v31  ;;  %v833_v8 = vadd.f32 %v2276_v42, %v744_v3  ;;  %v764_v2 = vadd.f32 %v2270_v26, %v657_v28  ;;  %v793_v59 = vadd.f32 %v2272_v30, %v658_v63  ;;  %v826_v3 = vadd.f32 %v2230_v10, %v767_v60 }
 0x171   : > { %v769_v9 = vpop.f32.mrf.mxu2  ;;  %v848_v43 = vmax.f32 %v832_v4, 0.0  ;;  %v827_v26 = vadd.f32 %v2230_v10, %v796_v16 }
 0x172   : > { %v798_v44 = vpop.f32.mrf.mxu3  ;;  %v849_v57 = vmax.f32 %v833_v8, 0.0  ;;  %v770_v53 = vadd.f32 %v769_v9, %v665_v33  ;;  %v822_v4 = vadd.f32 %v2266_v22, %v764_v2  ;;  %v823_v30 = vadd.f32 %v2266_v22, %v793_v59 }
 0x173   : > { %v1101_v19 = vpop.trf.xlu2  ;;  %896 = vmatpush.msra.mxu0 %v848_v43  ;;  %v799_v58 = vadd.f32 %v798_v44, %v666_v38 }
 0x174   : > { %1181 = vst.msk [vmem:[%s2254_s30 + $0x128] sm:$0xff] %vm679_vm1, %v1101_v19  ;;  %925 = vmatpush.msra.mxu1 %v849_v57  ;;  %v830_v1 = vadd.f32 %v2242_v14, %v770_v53  ;;  %v838_v8 = vmax.f32 %v822_v4, 0.0  ;;  %v839_v22 = vmax.f32 %v823_v30, 0.0 }
 0x175   : > { %897 = vmatpush.msra.mxu0 %v844_v21  ;;  %v831_v24 = vadd.f32 %v2242_v14, %v799_v58  ;;  %v842_v14 = vmax.f32 %v826_v3, 0.0  ;;  %v873_v45 = vpop.permute.xlu1 %872 }
 0x176   : > { %926 = vmatpush.msra.mxu1 %v845_v23  ;;  %v846_v37 = vmax.f32 %v830_v1, 0.0 }
 0x177   : > { %v1037_v41 = vpop.trf.xlu0  ;;  %898 = vmatpush.msra.mxu0 %v840_v25  ;;  %v847_v32 = vmax.f32 %v831_v24, 0.0 }
 0x178   : > { %1149 = vst.msk [vmem:[%s2254_s30 + $0x28] sm:$0xff] %vm679_vm1, %v1037_v41  ;;  %927 = vmatpush.msra.mxu1 %v841_v34 }
 0x179   : > { %v772_v7 = vpop.f32.mrf.mxu2  ;;  %899 = vmatpush.msra.mxu0 %v836_v47 }
 0x17a   : > { %v773_v61 = vadd.f32 %v772_v7, %v669_v54  ;;  %v801_v62 = vpop.f32.mrf.mxu3  ;;  %928 = vmatpush.msra.mxu1 %v837_v35  ;;  %1687 = vmatmul.msk.f32.vlgmr.msra.gmra.mxu0 %vm457_vm0, %v869_v36 }
 0x17b   : > { %v802_v0 = vadd.f32 %v801_v62, %v670_v27  ;;  %v1102_v49 = vpop.trf.xlu2  ;;  %1691 = vmatmul.msk.f32.vlgmr.msra.gmra.mxu1 %vm457_vm0, %v869_v36 }
 0x17c   : > { %v834_v46 = vadd.f32 %v2276_v42, %v773_v61  ;;  %1182 = vst.msk [vmem:[%s2254_s30 + $0x130] sm:$0xff] %vm679_vm1, %v1102_v49 }
 0x17d   : > { %v835_v48 = vadd.f32 %v2276_v42, %v802_v0  ;;  %v843_v42 = vmax.f32 %v827_v26, 0.0  ;;  %v1064_v18 = vpop.trf.xlu1 }
 0x17e   : > { %v850_v31 = vmax.f32 %v834_v46, 0.0  ;;  %1160 = vst.msk [vmem:[%s2254_s30 + $0x80] sm:$0xff] %vm679_vm1, %v1064_v18 }
 0x17f   : > { %v851_v29 = vmax.f32 %v835_v48, 0.0  ;;  %v1038_v40 = vpop.trf.xlu0 }
 0x180   : > { %954 = vmatpush.msra.mxu2 %v850_v31  ;;  %1150 = vst.msk [vmem:[%s2254_s30 + $0x30] sm:$0xff] %vm679_vm1, %v1038_v40 }
 0x181   : > { %983 = vmatpush.msra.mxu3 %v851_v29 }
 0x182   : > { %955 = vmatpush.msra.mxu2 %v846_v37  ;;  %1688 = vmatmul.msk.f32.gmra.mxu0 %vm457_vm0, %v2239_v13 }
 0x183   : > { %984 = vmatpush.msra.mxu3 %v847_v32  ;;  %v1103_v10 = vpop.trf.xlu2  ;;  %1692 = vmatmul.msk.f32.gmra.mxu1 %vm457_vm0, %v2239_v13 }
 0x184   : > { %956 = vmatpush.msra.mxu2 %v842_v14  ;;  %1183 = vst.msk [vmem:[%s2254_s30 + $0x138] sm:$0xff] %vm679_vm1, %v1103_v10 }
 0x185   : > { %985 = vmatpush.msra.mxu3 %v843_v42  ;;  %v1065_v25 = vpop.trf.xlu1 }
 0x186   : > { %957 = vmatpush.msra.mxu2 %v838_v8  ;;  %1161 = vst.msk [vmem:[%s2254_s30 + $0x88] sm:$0xff] %vm679_vm1, %v1065_v25 }
 0x187   : > { %986 = vmatpush.msra.mxu3 %v839_v22  ;;  %1695 = vmatmul.msk.f32.vlgmr.msra.gmra.mxu2 %vm457_vm0, %v869_v36  ;;  %v1039_v9 = vpop.trf.xlu0 }
 0x188   : > { %1699 = vmatmul.msk.f32.vlgmr.msra.gmra.mxu3 %vm457_vm0, %v869_v36  ;;  %1151 = vst.msk [vmem:[%s2254_s30 + $0x38] sm:$0xff] %vm679_vm1, %v1039_v9 }
 0x18a   : > { %1689 = vmatmul.msk.f32.gmra.mxu0 %vm457_vm0, %v873_v45 }
 0x18b   : > { %v1104_v43 = vpop.trf.xlu2  ;;  %1693 = vmatmul.msk.f32.gmra.mxu1 %vm457_vm0, %v873_v45 }
 0x18c   : > { %1184 = vst.msk [vmem:[%s2254_s30 + $0x140] sm:$0xff] %vm679_vm1, %v1104_v43 }
 0x18d   : > { %v1066_v34 = vpop.trf.xlu1 }
 0x18e   : > { %1162 = vst.msk [vmem:[%s2254_s30 + $0x90] sm:$0xff] %vm679_vm1, %v1066_v34 }
 0x18f   : > { %1696 = vmatmul.msk.f32.gmra.mxu2 %vm457_vm0, %v2239_v13  ;;  %v1040_v44 = vpop.trf.xlu0 }
 0x190   : > { %1700 = vmatmul.msk.f32.gmra.mxu3 %vm457_vm0, %v2239_v13  ;;  %1152 = vst.msk [vmem:[%s2254_s30 + $0x40] sm:$0xff] %vm679_vm1, %v1040_v44 }
 0x192   : > { %1690 = vmatmul.msk.f32.gmra.mxu0 %vm457_vm0, %v2244_v15 }
 0x193   : > { %v1105_v56 = vpop.trf.xlu2  ;;  %1694 = vmatmul.msk.f32.gmra.mxu1 %vm457_vm0, %v2244_v15 }
 0x194   : > { %1185 = vst.msk [vmem:[%s2254_s30 + $0x148] sm:$0xff] %vm679_vm1, %v1105_v56 }
 0x197   : > { %1697 = vmatmul.msk.f32.gmra.mxu2 %vm457_vm0, %v873_v45  ;;  %v1041_v57 = vpop.trf.xlu0 }
 0x198   : > { %1701 = vmatmul.msk.f32.gmra.mxu3 %vm457_vm0, %v873_v45  ;;  %1153 = vst.msk [vmem:[%s2254_s30 + $0x48] sm:$0xff] %vm679_vm1, %v1041_v57 }
 0x19b   : > { %v1106_v13 = vpop.trf.xlu2 }
 0x19c   : > { %1186 = vst.msk [vmem:[%s2254_s30 + $0x150] sm:$0xff] %vm679_vm1, %v1106_v13 }
 0x19f   : > { %1698 = vmatmul.msk.f32.gmra.mxu2 %vm457_vm0, %v2244_v15  ;;  %v1042_v19 = vpop.trf.xlu0 }
 0x1a0   : > { %1702 = vmatmul.msk.f32.gmra.mxu3 %vm457_vm0, %v2244_v15  ;;  %1154 = vst.msk [vmem:[%s2254_s30 + $0x50] sm:$0xff] %vm679_vm1, %v1042_v19 }
 0x1a3   : > { %v1107_v20 = vpop.trf.xlu2 }
 0x1a4   : > { %1187 = vst.msk [vmem:[%s2254_s30 + $0x158] sm:$0xff] %vm679_vm1, %v1107_v20 }
 0x1a7   : > { %v1043_v21 = vpop.trf.xlu0 }
 0x1a8   : > { %1155 = vst.msk [vmem:[%s2254_s30 + $0x58] sm:$0xff] %vm679_vm1, %v1043_v21 }
 0x1ab   : > { %1272 = vxpose.xlu0.b32.start [1/2] (short) %v2141_v51, 128  ;;  %v1108_v23 = vpop.trf.xlu2 }
 0x1ac   : > { %1188 = vst.msk [vmem:[%s2254_s30 + $0x160] sm:$0xff] %vm679_vm1, %v1108_v23 }
 0x1af   : > { %v1044_v15 = vpop.trf.xlu0 }
 0x1b0   : > { %1156 = vst.msk [vmem:[%s2254_s30 + $0x60] sm:$0xff] %vm679_vm1, %v1044_v15 }
 0x1b2   : > { %1304 = vxpose.xlu2.b32.start [1/2] (short) %v2143_v52, 128 }
 0x1b3   : > { %1273 = vxpose.xlu0.b32.end [2/2] (short) %v2164_v5, 128  ;;  %v1109_v33 = vpop.trf.xlu2  ;;  %v1067_v5 = vpop.trf.xlu1 }
 0x1b4   : > { %1189 = vst.msk [vmem:[%s2254_s30 + $0x168] sm:$0xff] %vm679_vm1, %v1109_v33 }
 0x1b5   : > { %1163 = vst.msk [vmem:[%s2254_s30 + $0x98] sm:$0xff] %vm679_vm1, %v1067_v5 }
 0x1b7   : > { %v1045_v51 = vpop.trf.xlu0 }
 0x1b8   : > { %1157 = vst.msk [vmem:[%s2254_s30 + $0x68] sm:$0xff] %vm679_vm1, %v1045_v51 }
 0x1ba   : > { %1305 = vxpose.xlu2.b32.end [2/2] (short) %v2166_v6, 128 }
 0x1bb   : > { %v1110_v38 = vpop.trf.xlu2  ;;  %v1068_v50 = vpop.trf.xlu1 }
 0x1bc   : > { %1190 = vst.msk [vmem:[%s2254_s30 + $0x170] sm:$0xff] %vm679_vm1, %v1110_v38 }
 0x1bd   : > { %1164 = vst.msk [vmem:[%s2254_s30 + $0xa0] sm:$0xff] %vm679_vm1, %v1068_v50 }
 0x1bf   : > { %v1046_v52 = vpop.trf.xlu0 }
 0x1c0   : > { %1158 = vst.msk [vmem:[%s2254_s30 + $0x70] sm:$0xff] %vm679_vm1, %v1046_v52 }
 0x1c3   : > { %v1111_v41 = vpop.trf.xlu2  ;;  %v1069_v54 = vpop.trf.xlu1 }
 0x1c4   : > { %1191 = vst.msk [vmem:[%s2254_s30 + $0x178] sm:$0xff] %vm679_vm1, %v1111_v41 }
 0x1c5   : > { %1165 = vst.msk [vmem:[%s2254_s30 + $0xa8] sm:$0xff] %vm679_vm1, %v1069_v54 }
 0x1c7   : > { %v1047_v47 = vpop.trf.xlu0 }
 0x1c8   : > { %1159 = vst.msk [vmem:[%s2254_s30 + $0x78] sm:$0xff] %vm679_vm1, %v1047_v47 }
 0x1cb   : > { %v1224_v6 = vpop.trf.xlu2  ;;  %v1070_v7 = vpop.trf.xlu1 }
 0x1cc   : > { %1336 = vst.msk [vmem:[%s2427_s9] sm:$0xff] %vm679_vm1, %v1224_v6 }
 0x1cd   : > { %1166 = vst.msk [vmem:[%s2254_s30 + $0xb0] sm:$0xff] %vm679_vm1, %v1070_v7 }
 0x1cf   : > { %v1128_v53 = vpop.trf.xlu0 }
 0x1d0   : > { %1192 = vst.msk [vmem:[%s2254_s30 + $0x180] sm:$0xff] %vm679_vm1, %v1128_v53 }
 0x1d3   : > { %v1225_v35 = vpop.trf.xlu2  ;;  %v1071_v28 = vpop.trf.xlu1 }
 0x1d4   : > { %1337 = vst.msk [vmem:[%s2427_s9 + $0x8] sm:$0xff] %vm679_vm1, %v1225_v35 }
 0x1d5   : > { %1167 = vst.msk [vmem:[%s2254_s30 + $0xb8] sm:$0xff] %vm679_vm1, %v1071_v28 }
 0x1d7   : > { %v1129_v55 = vpop.trf.xlu0 }
 0x1d8   : > { %1193 = vst.msk [vmem:[%s2254_s30 + $0x188] sm:$0xff] %vm679_vm1, %v1129_v55 }
 0x1db   : > { %v1226_v58 = vpop.trf.xlu2  ;;  %v1072_v62 = vpop.trf.xlu1 }
 0x1dc   : > { %1338 = vst.msk [vmem:[%s2427_s9 + $0x10] sm:$0xff] %vm679_vm1, %v1226_v58 }
 0x1dd   : > { %1168 = vst.msk [vmem:[%s2254_s30 + $0xc0] sm:$0xff] %vm679_vm1, %v1072_v62 }
 0x1df   : > { %v1130_v27 = vpop.trf.xlu0 }
 0x1e0   : > { %1194 = vst.msk [vmem:[%s2254_s30 + $0x190] sm:$0xff] %vm679_vm1, %v1130_v27 }
 0x1e3   : > { %v1227_v36 = vpop.trf.xlu2  ;;  %v1073_v0 = vpop.trf.xlu1 }
 0x1e4   : > { %1339 = vst.msk [vmem:[%s2427_s9 + $0x18] sm:$0xff] %vm679_vm1, %v1227_v36 }
 0x1e5   : > { %1169 = vst.msk [vmem:[%s2254_s30 + $0xc8] sm:$0xff] %vm679_vm1, %v1073_v0 }
 0x1e7   : > { %v1131_v60 = vpop.trf.xlu0 }
 0x1e8   : > { %1195 = vst.msk [vmem:[%s2254_s30 + $0x198] sm:$0xff] %vm679_vm1, %v1131_v60 }
 0x1eb   : > { %v1228_v61 = vpop.trf.xlu2  ;;  %v1074_v48 = vpop.trf.xlu1 }
 0x1ec   : > { %1340 = vst.msk [vmem:[%s2427_s9 + $0x20] sm:$0xff] %vm679_vm1, %v1228_v61 }
 0x1ed   : > { %1170 = vst.msk [vmem:[%s2254_s30 + $0xd0] sm:$0xff] %vm679_vm1, %v1074_v48 }
 0x1ef   : > { %v1132_v63 = vpop.trf.xlu0 }
 0x1f0   : > { %1196 = vst.msk [vmem:[%s2254_s30 + $0x1a0] sm:$0xff] %vm679_vm1, %v1132_v63 }
 0x1f3   : > { %v1229_v16 = vpop.trf.xlu2  ;;  %v1075_v37 = vpop.trf.xlu1 }
 0x1f4   : > { %1341 = vst.msk [vmem:[%s2427_s9 + $0x28] sm:$0xff] %vm679_vm1, %v1229_v16 }
 0x1f5   : > { %1171 = vst.msk [vmem:[%s2254_s30 + $0xd8] sm:$0xff] %vm679_vm1, %v1075_v37 }
 0x1f7   : > { %v1133_v49 = vpop.trf.xlu0  ;;  %v901_v2 = vpop.f32.mrf.mxu0 }
 0x1f8   : > { %1197 = vst.msk [vmem:[%s2254_s30 + $0x1a8] sm:$0xff] %vm679_vm1, %v1133_v49  ;;  %v930_v1 = vpop.f32.mrf.mxu1  ;;  %v902_v46 = vadd.f32 %v901_v2, %v2232_v11 }
 0x1f9   : > { %v931_v59 = vadd.f32 %v930_v1, %v2232_v11 }
 0x1fa   : > { %1000 = vst [vmem:[%s2469_s8] sm:$0xff] %v902_v46 }
 0x1fb   : > { %v1230_v24 = vpop.trf.xlu2  ;;  %1001 = vst [vmem:[%s2469_s8 + $0x8] sm:$0xff] %v931_v59  ;;  %v1076_v44 = vpop.trf.xlu1 }
 0x1fc   : > { %1342 = vst.msk [vmem:[%s2427_s9 + $0x30] sm:$0xff] %vm679_vm1, %v1230_v24 }
 0x1fd   : > { %1172 = vst.msk [vmem:[%s2254_s30 + $0xe0] sm:$0xff] %vm679_vm1, %v1076_v44 }
 0x1ff   : > { %v1134_v3 = vpop.trf.xlu0  ;;  %v904_v31 = vpop.f32.mrf.mxu0 }
 0x200   : > { %1198 = vst.msk [vmem:[%s2254_s30 + $0x1b0] sm:$0xff] %vm679_vm1, %v1134_v3  ;;  %v933_v26 = vpop.f32.mrf.mxu1  ;;  %v905_v29 = vadd.f32 %v904_v31, %v2302_v39 }
 0x201   : > { %v934_v40 = vadd.f32 %v933_v26, %v2302_v39 }
 0x202   : > { %1004 = vst [vmem:[%s2469_s8 + $0x20] sm:$0xff] %v905_v29 }
 0x203   : > { %v1231_v4 = vpop.trf.xlu2  ;;  %1005 = vst [vmem:[%s2469_s8 + $0x28] sm:$0xff] %v934_v40  ;;  %v1077_v25 = vpop.trf.xlu1 }
 0x204   : > { %1343 = vst.msk [vmem:[%s2427_s9 + $0x38] sm:$0xff] %vm679_vm1, %v1231_v4 }
 0x205   : > { %1173 = vst.msk [vmem:[%s2254_s30 + $0xe8] sm:$0xff] %vm679_vm1, %v1077_v25 }
 0x207   : > { %v1135_v30 = vpop.trf.xlu0  ;;  %v907_v32 = vpop.f32.mrf.mxu0 }
 0x208   : > { %1199 = vst.msk [vmem:[%s2254_s30 + $0x1b8] sm:$0xff] %vm679_vm1, %v1135_v30  ;;  %v936_v14 = vpop.f32.mrf.mxu1  ;;  %v908_v42 = vadd.f32 %v907_v32, %v2235_v12 }
 0x209   : > { %v937_v10 = vadd.f32 %v936_v14, %v2235_v12 }
 0x20a   : > { %v959_v8 = vpop.f32.mrf.mxu2  ;;  %1008 = vst [vmem:[%s2469_s8 + $0x40] sm:$0xff] %v908_v42 }
 0x20b   : > { %v960_v22 = vadd.f32 %v959_v8, %v2232_v11  ;;  %v988_v9 = vpop.f32.mrf.mxu3  ;;  %v1232_v45 = vpop.trf.xlu2  ;;  %1009 = vst [vmem:[%s2469_s8 + $0x48] sm:$0xff] %v937_v10 }
 0x20c   : > { %v989_v43 = vadd.f32 %v988_v9, %v2232_v11  ;;  %1344 = vst.msk [vmem:[%s2427_s9 + $0x40] sm:$0xff] %vm679_vm1, %v1232_v45  ;;  %v1078_v5 = vpop.trf.xlu1 }
 0x20d   : > { %1002 = vst [vmem:[%s2469_s8 + $0x10] sm:$0xff] %v960_v22 }
 0x20e   : > { %1003 = vst [vmem:[%s2469_s8 + $0x18] sm:$0xff] %v989_v43 }
 0x20f   : > { %v1136_v56 = vpop.trf.xlu0  ;;  %v910_v57 = vpop.f32.mrf.mxu0  ;;  %1174 = vst.msk [vmem:[%s2254_s30 + $0xf0] sm:$0xff] %vm679_vm1, %v1078_v5 }
 0x210   : > { %1200 = vst.msk [vmem:[%s2254_s30 + $0x1c0] sm:$0xff] %vm679_vm1, %v1136_v56  ;;  %v939_v13 = vpop.f32.mrf.mxu1  ;;  %v911_v19 = vadd.f32 %v910_v57, %v2247_v17 }
 0x211   : > { %v940_v11 = vadd.f32 %v939_v13, %v2247_v17 }
 0x212   : > { %v962_v20 = vpop.f32.mrf.mxu2  ;;  %1012 = vst [vmem:[%s2469_s8 + $0x60] sm:$0xff] %v911_v19 }
 0x213   : > { %v963_v21 = vadd.f32 %v962_v20, %v2302_v39  ;;  %v991_v18 = vpop.f32.mrf.mxu3  ;;  %v1233_v23 = vpop.trf.xlu2  ;;  %1013 = vst [vmem:[%s2469_s8 + $0x68] sm:$0xff] %v940_v11 }
 0x214   : > { %v992_v15 = vadd.f32 %v991_v18, %v2302_v39  ;;  %1345 = vst.msk [vmem:[%s2427_s9 + $0x48] sm:$0xff] %vm679_vm1, %v1233_v23  ;;  %v1079_v54 = vpop.trf.xlu1 }
 0x215   : > { %1006 = vst [vmem:[%s2469_s8 + $0x30] sm:$0xff] %v963_v21 }
 0x216   : > { %1007 = vst [vmem:[%s2469_s8 + $0x38] sm:$0xff] %v992_v15 }
 0x217   : > { %v1137_v33 = vpop.trf.xlu0  ;;  %1175 = vst.msk [vmem:[%s2254_s30 + $0xf8] sm:$0xff] %vm679_vm1, %v1079_v54 }
 0x218   : > { %1201 = vst.msk [vmem:[%s2254_s30 + $0x1c8] sm:$0xff] %vm679_vm1, %v1137_v33 }
 0x21a   : > { %v965_v51 = vpop.f32.mrf.mxu2 }
 0x21b   : > { %v966_v34 = vadd.f32 %v965_v51, %v2235_v12  ;;  %v994_v38 = vpop.f32.mrf.mxu3  ;;  %v1234_v52 = vpop.trf.xlu2 }
 0x21c   : > { %v995_v39 = vadd.f32 %v994_v38, %v2235_v12  ;;  %1346 = vst.msk [vmem:[%s2427_s9 + $0x50] sm:$0xff] %vm679_vm1, %v1234_v52  ;;  %v1256_v58 = vpop.trf.xlu1 }
 0x21d   : > { %1010 = vst [vmem:[%s2469_s8 + $0x50] sm:$0xff] %v966_v34 }
 0x21e   : > { %1011 = vst [vmem:[%s2469_s8 + $0x58] sm:$0xff] %v995_v39 }
 0x21f   : > { %v1138_v41 = vpop.trf.xlu0  ;;  %1352 = vst.msk [vmem:[%s2427_s9 + $0x80] sm:$0xff] %vm679_vm1, %v1256_v58 }
 0x220   : > { %1202 = vst.msk [vmem:[%s2254_s30 + $0x1d0] sm:$0xff] %vm679_vm1, %v1138_v41 }
 0x222   : > { %v968_v47 = vpop.f32.mrf.mxu2 }
 0x223   : > { %v969_v50 = vadd.f32 %v968_v47, %v2247_v17  ;;  %v997_v6 = vpop.f32.mrf.mxu3  ;;  %v1235_v12 = vpop.trf.xlu2 }
 0x224   : > { %v998_v53 = vadd.f32 %v997_v6, %v2247_v17  ;;  %1347 = vst.msk [vmem:[%s2427_s9 + $0x58] sm:$0xff] %vm679_vm1, %v1235_v12  ;;  %v1257_v27 = vpop.trf.xlu1 }
 0x225   : > { %1014 = vst [vmem:[%s2469_s8 + $0x70] sm:$0xff] %v969_v50 }
 0x226   : > { %1015 = vst [vmem:[%s2469_s8 + $0x78] sm:$0xff] %v998_v53 }
 0x227   : > { %v1139_v35 = vpop.trf.xlu0  ;;  %1353 = vst.msk [vmem:[%s2427_s9 + $0x88] sm:$0xff] %vm679_vm1, %v1257_v27 }
 0x228   : > { %1203 = vst.msk [vmem:[%s2254_s30 + $0x1d8] sm:$0xff] %vm679_vm1, %v1139_v35 }
 0x22b   : > { %v1236_v55 = vpop.trf.xlu2 }
 0x22c   : > { %1348 = vst.msk [vmem:[%s2427_s9 + $0x60] sm:$0xff] %vm679_vm1, %v1236_v55  ;;  %v1258_v60 = vpop.trf.xlu1 }
 0x22d   : > { %1354 = vst.msk [vmem:[%s2427_s9 + $0x90] sm:$0xff] %vm679_vm1, %v1258_v60 }
 0x22f   : > { %v1140_v17 = vpop.trf.xlu0 }
 0x230   : > { %1204 = vst.msk [vmem:[%s2254_s30 + $0x1e0] sm:$0xff] %vm679_vm1, %v1140_v17 }
 0x233   : > { %v1237_v7 = vpop.trf.xlu2 }
 0x234   : > { %1349 = vst.msk [vmem:[%s2427_s9 + $0x68] sm:$0xff] %vm679_vm1, %v1237_v7  ;;  %v1259_v63 = vpop.trf.xlu1 }
 0x235   : > { %1355 = vst.msk [vmem:[%s2427_s9 + $0x98] sm:$0xff] %vm679_vm1, %v1259_v63 }
 0x237   : > { %v1141_v36 = vpop.trf.xlu0 }
 0x238   : > { %1205 = vst.msk [vmem:[%s2254_s30 + $0x1e8] sm:$0xff] %vm679_vm1, %v1141_v36 }
 0x23b   : > { %v1238_v28 = vpop.trf.xlu2 }
 0x23c   : > { %1350 = vst.msk [vmem:[%s2427_s9 + $0x70] sm:$0xff] %vm679_vm1, %v1238_v28 }
 0x23f   : > { %v1142_v61 = vpop.trf.xlu0 }
 0x240   : > { %1206 = vst.msk [vmem:[%s2254_s30 + $0x1f0] sm:$0xff] %vm679_vm1, %v1142_v61 }
 0x243   : > { %v1239_v62 = vpop.trf.xlu2 }
 0x244   : > { %1351 = vst.msk [vmem:[%s2427_s9 + $0x78] sm:$0xff] %vm679_vm1, %v1239_v62 }
 0x247   : > { %v1143_v16 = vpop.trf.xlu0 }
 0x248   : > { %1207 = vst.msk [vmem:[%s2254_s30 + $0x1f8] sm:$0xff] %vm679_vm1, %v1143_v16 }
 0x24b   : > { %v1320_v0 = vpop.trf.xlu2 }
 0x24c   : > { %1384 = vst.msk [vmem:[%s2427_s9 + $0x180] sm:$0xff] %vm679_vm1, %v1320_v0 }
 0x24d   : > { %1870 = shalt.err (!%p1867_p0)
}
 0x24e   : > { %s1935_s29 = smov 512   ;;  %s1936_s14 = smov 32   ;;  %v1260_v49 = vpop.trf.xlu1 }
 0x24f   : > { %1715 = dma.vmem_to_hbm [thread:$0]  (%p2023_p9), %s1434_s18, 2048, %s1436_s19, %s1401_s20, %s1935_s29, %s1935_s29, %s1936_s14   ;;  %v1288_v2 = vpop.trf.xlu0 }
 0x250   : > { %1356 = vst.msk [vmem:[%s2427_s9 + $0xa0] sm:$0xff] %vm679_vm1, %v1260_v49 }
 0x251   : > { %1368 = vst.msk [vmem:[%s2427_s9 + $0x100] sm:$0xff] %vm679_vm1, %v1288_v2 }
 0x253   : > { %v1321_v1 = vpop.trf.xlu2 }
 0x254   : > { %1385 = vst.msk [vmem:[%s2427_s9 + $0x188] sm:$0xff] %vm679_vm1, %v1321_v1 }
 0x256   : > { %v1261_v46 = vpop.trf.xlu1 }
 0x257   : > { %v1289_v59 = vpop.trf.xlu0  ;;  %1357 = vst.msk [vmem:[%s2427_s9 + $0xa8] sm:$0xff] %vm679_vm1, %v1261_v46 }
 0x258   : > { %1369 = vst.msk [vmem:[%s2427_s9 + $0x108] sm:$0xff] %vm679_vm1, %v1289_v59 }
 0x25b   : > { %v1322_v24 = vpop.trf.xlu2 }
 0x25c   : > { %1386 = vst.msk [vmem:[%s2427_s9 + $0x190] sm:$0xff] %vm679_vm1, %v1322_v24 }
 0x25e   : > { %v1262_v48 = vpop.trf.xlu1 }
 0x25f   : > { %v1290_v3 = vpop.trf.xlu0  ;;  %1358 = vst.msk [vmem:[%s2427_s9 + $0xb0] sm:$0xff] %vm679_vm1, %v1262_v48 }
 0x260   : > { %1370 = vst.msk [vmem:[%s2427_s9 + $0x110] sm:$0xff] %vm679_vm1, %v1290_v3 }
 0x263   : > { %v1323_v31 = vpop.trf.xlu2 }
 0x264   : > { %1387 = vst.msk [vmem:[%s2427_s9 + $0x198] sm:$0xff] %vm679_vm1, %v1323_v31 }
 0x266   : > { %v1263_v26 = vpop.trf.xlu1 }
 0x267   : > { %v1291_v29 = vpop.trf.xlu0  ;;  %1359 = vst.msk [vmem:[%s2427_s9 + $0xb8] sm:$0xff] %vm679_vm1, %v1263_v26 }
 0x268   : > { %1371 = vst.msk [vmem:[%s2427_s9 + $0x118] sm:$0xff] %vm679_vm1, %v1291_v29 }
 0x26b   : > { %v1324_v40 = vpop.trf.xlu2 }
 0x26c   : > { %1388 = vst.msk [vmem:[%s2427_s9 + $0x1a0] sm:$0xff] %vm679_vm1, %v1324_v40 }
 0x26e   : > { %v1264_v4 = vpop.trf.xlu1 }
 0x26f   : > { %v1292_v37 = vpop.trf.xlu0  ;;  %1360 = vst.msk [vmem:[%s2427_s9 + $0xc0] sm:$0xff] %vm679_vm1, %v1264_v4 }
 0x270   : > { %1372 = vst.msk [vmem:[%s2427_s9 + $0x120] sm:$0xff] %vm679_vm1, %v1292_v37 }
 0x273   : > { %v1325_v30 = vpop.trf.xlu2 }
 0x274   : > { %1389 = vst.msk [vmem:[%s2427_s9 + $0x1a8] sm:$0xff] %vm679_vm1, %v1325_v30 }
 0x276   : > { %v1265_v32 = vpop.trf.xlu1 }
 0x277   : > { %v1293_v14 = vpop.trf.xlu0  ;;  %1361 = vst.msk [vmem:[%s2427_s9 + $0xc8] sm:$0xff] %vm679_vm1, %v1265_v32 }
 0x278   : > { %1373 = vst.msk [vmem:[%s2427_s9 + $0x128] sm:$0xff] %vm679_vm1, %v1293_v14 }
 0x27b   : > { %v1326_v42 = vpop.trf.xlu2 }
 0x27c   : > { %1390 = vst.msk [vmem:[%s2427_s9 + $0x1b0] sm:$0xff] %vm679_vm1, %v1326_v42 }
 0x27e   : > { %v1266_v10 = vpop.trf.xlu1 }
 0x27f   : > { %v1294_v8 = vpop.trf.xlu0  ;;  %1362 = vst.msk [vmem:[%s2427_s9 + $0xd0] sm:$0xff] %vm679_vm1, %v1266_v10 }
 0x280   : > { %1374 = vst.msk [vmem:[%s2427_s9 + $0x130] sm:$0xff] %vm679_vm1, %v1294_v8 }
 0x283   : > { %v1327_v22 = vpop.trf.xlu2 }
 0x284   : > { %1391 = vst.msk [vmem:[%s2427_s9 + $0x1b8] sm:$0xff] %vm679_vm1, %v1327_v22 }
 0x286   : > { %v1267_v9 = vpop.trf.xlu1 }
 0x287   : > { %v1295_v45 = vpop.trf.xlu0  ;;  %1363 = vst.msk [vmem:[%s2427_s9 + $0xd8] sm:$0xff] %vm679_vm1, %v1267_v9 }
 0x288   : > { %1375 = vst.msk [vmem:[%s2427_s9 + $0x138] sm:$0xff] %vm679_vm1, %v1295_v45 }
 0x28b   : > { %v1328_v43 = vpop.trf.xlu2 }
 0x28c   : > { %1392 = vst.msk [vmem:[%s2427_s9 + $0x1c0] sm:$0xff] %vm679_vm1, %v1328_v43 }
 0x28e   : > { %v1268_v44 = vpop.trf.xlu1 }
 0x28f   : > { %v1296_v56 = vpop.trf.xlu0  ;;  %1364 = vst.msk [vmem:[%s2427_s9 + $0xe0] sm:$0xff] %vm679_vm1, %v1268_v44 }
 0x290   : > { %1376 = vst.msk [vmem:[%s2427_s9 + $0x140] sm:$0xff] %vm679_vm1, %v1296_v56 }
 0x293   : > { %v1329_v57 = vpop.trf.xlu2 }
 0x294   : > { %1393 = vst.msk [vmem:[%s2427_s9 + $0x1c8] sm:$0xff] %vm679_vm1, %v1329_v57 }
 0x296   : > { %v1269_v13 = vpop.trf.xlu1 }
 0x297   : > { %v1297_v19 = vpop.trf.xlu0  ;;  %1365 = vst.msk [vmem:[%s2427_s9 + $0xe8] sm:$0xff] %vm679_vm1, %v1269_v13 }
 0x298   : > { %1377 = vst.msk [vmem:[%s2427_s9 + $0x148] sm:$0xff] %vm679_vm1, %v1297_v19 }
 0x29b   : > { %v1330_v11 = vpop.trf.xlu2 }
 0x29c   : > { %1394 = vst.msk [vmem:[%s2427_s9 + $0x1d0] sm:$0xff] %vm679_vm1, %v1330_v11 }
 0x29e   : > { %v1270_v20 = vpop.trf.xlu1 }
 0x29f   : > { %v1298_v21 = vpop.trf.xlu0  ;;  %1366 = vst.msk [vmem:[%s2427_s9 + $0xf0] sm:$0xff] %vm679_vm1, %v1270_v20 }
 0x2a0   : > { %1378 = vst.msk [vmem:[%s2427_s9 + $0x150] sm:$0xff] %vm679_vm1, %v1298_v21 }
 0x2a3   : > { %v1331_v18 = vpop.trf.xlu2 }
 0x2a4   : > { %1395 = vst.msk [vmem:[%s2427_s9 + $0x1d8] sm:$0xff] %vm679_vm1, %v1331_v18 }
 0x2a6   : > { %v1271_v23 = vpop.trf.xlu1 }
 0x2a7   : > { %v1299_v15 = vpop.trf.xlu0  ;;  %1367 = vst.msk [vmem:[%s2427_s9 + $0xf8] sm:$0xff] %vm679_vm1, %v1271_v23 }
 0x2a8   : > { %1379 = vst.msk [vmem:[%s2427_s9 + $0x158] sm:$0xff] %vm679_vm1, %v1299_v15 }
 0x2ab   : > { %v1332_v25 = vpop.trf.xlu2 }
 0x2ac   : > { %1396 = vst.msk [vmem:[%s2427_s9 + $0x1e0] sm:$0xff] %vm679_vm1, %v1332_v25 }
 0x2af   : > { %v1300_v33 = vpop.trf.xlu0 }
 0x2b0   : > { %1380 = vst.msk [vmem:[%s2427_s9 + $0x160] sm:$0xff] %vm679_vm1, %v1300_v33 }
 0x2b3   : > { %v1333_v51 = vpop.trf.xlu2 }
 0x2b4   : > { %1397 = vst.msk [vmem:[%s2427_s9 + $0x1e8] sm:$0xff] %vm679_vm1, %v1333_v51 }
 0x2b7   : > { %v1301_v34 = vpop.trf.xlu0 }
 0x2b8   : > { %1381 = vst.msk [vmem:[%s2427_s9 + $0x168] sm:$0xff] %vm679_vm1, %v1301_v34 }
 0x2bb   : > { %v1334_v38 = vpop.trf.xlu2 }
 0x2bc   : > { %1398 = vst.msk [vmem:[%s2427_s9 + $0x1f0] sm:$0xff] %vm679_vm1, %v1334_v38 }
 0x2bf   : > { %v1302_v52 = vpop.trf.xlu0 }
 0x2c0   : > { %1382 = vst.msk [vmem:[%s2427_s9 + $0x170] sm:$0xff] %vm679_vm1, %v1302_v52 }
 0x2c3   : > { %v1335_v39 = vpop.trf.xlu2 }
 0x2c4   : > { %1399 = vst.msk [vmem:[%s2427_s9 + $0x1f8] sm:$0xff] %vm679_vm1, %v1335_v39 }
 0x2c7   : > { %v1303_v5 = vpop.trf.xlu0 }
 0x2c8   : > { %1383 = vst.msk [vmem:[%s2427_s9 + $0x178] sm:$0xff] %vm679_vm1, %v1303_v5 }
 0x2c9 PF: > { %s1458_s10 = sand.u32 1, %s1905_s21   ;;  %p1722_p9 = pnand %p1641_p12, %p2030_p11 }
 0x2ca   : > { %s1459_s13 = scalar_lea.sflag [#allocation4], %s1458_s10 }
 0x2cb   : > { %p1723_p1 = pneg %p1722_p9 }
 0x2cd   : > { %1900 = dma.done.wait (%p1723_p1), %s1459_s13, 2048  }
 0x2ce   : > { %1902 = vsyncadd (%p1723_p1), %s1459_s13, 4294965248  ;;  %s23_s26 = sadd.s32 1, %s1925_s26   ;;  %s2701_s9 = sld [smem:[#allocation8_spill]] }
 0x2cf   : > { %p20_p2 = scmp.ge.s32.totalorder %s23_s26, 4   ;;  %s2702_s21 = smov %s1909_s22 }
 0x2d0   : > { %s2703_s22 = smov %s1913_s23  ;;  %s2704_s23 = smov %s2028_s11 }
 0x2d1   : > { %s2705_s24 = smov %s1921_s25  ;;  %22 = sbr.rel (!%p20_p2) target bundleno = 6 (0x6), region = 111 }
 0x2d4   : > { %s2706_s25 = smov %s2701_s9 }
 0x2d6   :  { %1489 = vsyncpa [#allocation3], 1 }
 0x2d7   :  { %1491 = vsyncpa [#allocation3 + $0x1], 1 }
 0x2d8   :  { %1492 = vsyncpa [#allocation4], 1 }
 0x2d9   :  { %1494 = vsyncpa [#allocation4 + $0x1], 1 }

</bundles_post_ra>
